<compile_context>
chip_gen: v7x
topology: tpu7x:2x2x1
jax: 0.10.0
libtpu: 0.0.40
codegen_flags: <defaults>
</compile_context>

<pallas_src>
import functools

import jax
import jax.numpy as jnp
from jax.experimental import pallas as pl
from jax.experimental.pallas import tpu as pltpu


# ---------------- tiling constants ----------------
TM = 128                       # node-row tile (sublane/lane aligned)
TK = 512                       # feature (reduction) tile, multiple of 128
LANE = 128                     # lane width for padded hidden / class dims
VMEM_LIMIT = 32 * 1024 * 1024  # generous vs the few MiB these tiles need


def _round_up(v, m):
    return pl.cdiv(v, m) * m


# ---------------- kernel 1: support1 = X @ W1 (K-tiled accumulation) --------
def _xw_kernel(x_ref, w1_ref, s1_ref, acc_ref, *, tk):
    k = pl.program_id(1)

    @pl.when(k == 0)
    def _():
        acc_ref[...] = jnp.zeros_like(acc_ref)

    off = pl.multiple_of(k * tk, tk)
    w_tile = w1_ref[pl.ds(off, tk), :]          # (tk, H_pad) slice of resident W1
    acc_ref[...] += jnp.dot(x_ref[...].astype(jnp.float32), w_tile,
                            preferred_element_type=jnp.float32)

    @pl.when(k == pl.num_programs(1) - 1)
    def _():
        s1_ref[...] = acc_ref[...]


# ---------------- kernel 2: t = ReLU(adj @ support1 + b1) @ W2 --------------
def _layer1_kernel(adj_ref, s1_ref, b1_ref, w2_ref, t_ref):
    h = jnp.dot(adj_ref[...], s1_ref[...],
                preferred_element_type=jnp.float32) + b1_ref[...]
    h = jnp.maximum(h, 0.0)
    # TODO(synk): training-mode Dropout(p=0.5) not implemented; eval-mode
    # forward (identity) is reproduced here.
    t_ref[...] = jnp.dot(h, w2_ref[...], preferred_element_type=jnp.float32)


# ---------------- kernel 3: out = adj @ t + b2 -------------------------------
def _layer2_kernel(adj_ref, t_ref, b2_ref, out_ref):
    out_ref[...] = (jnp.dot(adj_ref[...], t_ref[...],
                            preferred_element_type=jnp.float32) + b2_ref[...])


def gcn_forward(x, adj, w1, b1, w2, b2):
    n, f = x.shape
    hdim = w1.shape[1]
    cdim = w2.shape[1]

    n_pad = _round_up(n, TM)
    k_pad = _round_up(f, TK)
    h_pad = _round_up(hdim, LANE)
    c_pad = _round_up(cdim, LANE)

    # Zero-padded, lane-aligned operands. X is a 0/1 bag-of-words matrix, so
    # the bf16 cast is exact; adj / weights stay f32 (bf16 adj would need a
    # tolerance re-check before adoption).
    xp = jnp.zeros((n_pad, k_pad), jnp.bfloat16).at[:n, :f].set(
        x.astype(jnp.bfloat16))
    adjp = jnp.zeros((n_pad, n_pad), jnp.float32).at[:n, :n].set(adj)
    w1p = jnp.zeros((k_pad, h_pad), jnp.float32).at[:f, :hdim].set(w1)
    b1p = jnp.zeros((1, h_pad), jnp.float32).at[:, :hdim].set(b1)
    w2p = jnp.zeros((h_pad, c_pad), jnp.float32).at[:hdim, :cdim].set(w2)
    b2p = jnp.zeros((1, c_pad), jnp.float32).at[:, :cdim].set(b2)

    m_tiles = n_pad // TM
    k_tiles = k_pad // TK

    # ---- kernel 1: support1 = X @ W1 (streamed X, resident W1, f32 acc) ----
    support1 = pl.pallas_call(
        functools.partial(_xw_kernel, tk=TK),
        out_shape=jax.ShapeDtypeStruct((n_pad, h_pad), jnp.float32),
        grid_spec=pltpu.PrefetchScalarGridSpec(
            num_scalar_prefetch=0,
            grid=(m_tiles, k_tiles),
            in_specs=[
                pl.BlockSpec((TM, TK), lambda m, k: (m, k)),        # X streamed
                pl.BlockSpec((k_pad, h_pad), lambda m, k: (0, 0)),  # W1 resident
            ],
            out_specs=pl.BlockSpec((TM, h_pad), lambda m, k: (m, 0)),
            scratch_shapes=[pltpu.VMEM((TM, h_pad), jnp.float32)],
        ),
        compiler_params=pltpu.CompilerParams(
            dimension_semantics=("parallel", "arbitrary"),
            vmem_limit_bytes=VMEM_LIMIT),
    )(xp, w1p)

    # ---- kernel 2: t = ReLU(adj @ support1 + b1) @ W2 (row-tiled) ----
    t = pl.pallas_call(
        _layer1_kernel,
        out_shape=jax.ShapeDtypeStruct((n_pad, c_pad), jnp.float32),
        grid_spec=pltpu.PrefetchScalarGridSpec(
            num_scalar_prefetch=0,
            grid=(m_tiles,),
            in_specs=[
                pl.BlockSpec((TM, n_pad), lambda m: (m, 0)),      # adj rows streamed
                pl.BlockSpec((n_pad, h_pad), lambda m: (0, 0)),   # support1 resident
                pl.BlockSpec((1, h_pad), lambda m: (0, 0)),       # b1
                pl.BlockSpec((h_pad, c_pad), lambda m: (0, 0)),   # W2 resident
            ],
            out_specs=pl.BlockSpec((TM, c_pad), lambda m: (m, 0)),
        ),
        compiler_params=pltpu.CompilerParams(
            dimension_semantics=("parallel",),
            vmem_limit_bytes=VMEM_LIMIT),
    )(adjp, support1, b1p, w2p)

    # ---- kernel 3: out = adj @ t + b2 (row-tiled, lane-dense output) ----
    out_pad = pl.pallas_call(
        _layer2_kernel,
        out_shape=jax.ShapeDtypeStruct((n_pad, c_pad), jnp.float32),
        grid_spec=pltpu.PrefetchScalarGridSpec(
            num_scalar_prefetch=0,
            grid=(m_tiles,),
            in_specs=[
                pl.BlockSpec((TM, n_pad), lambda m: (m, 0)),      # adj rows streamed
                pl.BlockSpec((n_pad, c_pad), lambda m: (0, 0)),   # t resident
                pl.BlockSpec((1, c_pad), lambda m: (0, 0)),       # b2
            ],
            out_specs=pl.BlockSpec((TM, c_pad), lambda m: (m, 0)),
        ),
        compiler_params=pltpu.CompilerParams(
            dimension_semantics=("parallel",),
            vmem_limit_bytes=VMEM_LIMIT),
    )(adjp, t, b2p)

    return out_pad[:n, :cdim]


def reference_forward(x, adj, w1, b1, w2, b2):
    h = jnp.maximum(adj @ (x @ w1) + b1, 0.0)
    return adj @ (h @ w2) + b2


if __name__ == "__main__":
    # Shapes implied by the module: in_features=3703, hidden_layer=64, classes=6.
    # Keep the node count small for the example graph.
    N_NODES = 32
    IN_FEATS = 3703
    HIDDEN = 64
    N_CLASS = 6

    key = jax.random.PRNGKey(0)
    k_x, k_a, k_w1, k_b1, k_w2, k_b2 = jax.random.split(key, 6)

    # Node features (sparse-ish binary bag-of-words style, float32).
    x = (jax.random.uniform(k_x, (N_NODES, IN_FEATS)) < 0.02).astype(jnp.float32)

    # Symmetric, self-looped, row-normalized adjacency.
    a_raw = (jax.random.uniform(k_a, (N_NODES, N_NODES)) < 0.1).astype(jnp.float32)
    a_sym = jnp.clip(a_raw + a_raw.T + jnp.eye(N_NODES, dtype=jnp.float32), 0.0, 1.0)
    adj = a_sym / jnp.sum(a_sym, axis=1, keepdims=True)

    # Deterministic GCNLayer-style uniform(-stdv, stdv) parameter init.
    stdv1 = 1.0 / jnp.sqrt(jnp.float32(HIDDEN))
    w1 = jax.random.uniform(k_w1, (IN_FEATS, HIDDEN), minval=-stdv1, maxval=stdv1,
                            dtype=jnp.float32)
    b1 = jax.random.uniform(k_b1, (1, HIDDEN), minval=-stdv1, maxval=stdv1,
                            dtype=jnp.float32)
    stdv2 = 1.0 / jnp.sqrt(jnp.float32(N_CLASS))
    w2 = jax.random.uniform(k_w2, (HIDDEN, N_CLASS), minval=-stdv2, maxval=stdv2,
                            dtype=jnp.float32)
    b2 = jax.random.uniform(k_b2, (1, N_CLASS), minval=-stdv2, maxval=stdv2,
                            dtype=jnp.float32)

    out = jax.jit(gcn_forward)(x, adj, w1, b1, w2, b2)
    out = jax.block_until_ready(out)

    ref = reference_forward(x, adj, w1, b1, w2, b2)
    assert out.shape == (N_NODES, N_CLASS)
    assert jnp.allclose(out, ref, atol=1e-4, rtol=1e-4)

    print("KERNEL_OK")
</pallas_src>

<mosaic_0001>
module attributes {stable_mosaic.version = 11 : i64} {
  func.func @_xw_kernel(%arg0: i32, %arg1: i32, %arg2: memref<128x512xbf16, #tpu.memory_space<vmem>>, %arg3: memref<4096x128xf32, #tpu.memory_space<vmem>>, %arg4: memref<128x128xf32, #tpu.memory_space<vmem>>, %arg5: memref<128x128xf32, #tpu.memory_space<vmem>>) attributes {dimension_semantics = [#tpu.dimension_semantics<parallel>, #tpu.dimension_semantics<arbitrary>], iteration_bounds = array<i64: 1, 8>, scalar_prefetch = 0 : i64, scratch_operands = 1 : i64, tpu.core_type = #tpu.core_type<tc>, window_params = [{transform_indices = @transform_0, window_bounds = array<i64: 128, 512>}, {pipeline_mode = #tpu.pipeline_mode<synchronous>, transform_indices = @transform_1, window_bounds = array<i64: 4096, 128>}, {transform_indices = @transform_2, window_bounds = array<i64: 128, 128>}]} {
    %c0_i32 = arith.constant 0 : i32
    %0 = arith.cmpi eq, %arg1, %c0_i32 : i32
    %1 = arith.extui %0 : i1 to i32
    %c0_i32_0 = arith.constant 0 : i32
    %2 = arith.cmpi ne, %1, %c0_i32_0 : i32
    scf.if %2 {
      %cst_8 = arith.constant 0.000000e+00 : f32
      %16 = vector.broadcast %cst_8 : f32 to vector<128x128xf32>
      %c0_9 = arith.constant 0 : index
      %c0_10 = arith.constant 0 : index
      %17 = vector.load %arg5[%c0_9, %c0_10] : memref<128x128xf32, #tpu.memory_space<vmem>>, vector<128x128xf32>
      tpu.vector_store %arg5[%c0_9, %c0_10], %16 {strides = array<i32>} : memref<128x128xf32, #tpu.memory_space<vmem>>, vector<128x128xf32>,
    } else {
    }
    %c512_i32 = arith.constant 512 : i32
    %3 = arith.muli %arg1, %c512_i32 : i32
    %4 = tpu.assume_multiple %3, 512 : i32
    %5 = arith.index_cast %4 : i32 to index
    %c0 = arith.constant 0 : index
    %6 = vector.load %arg3[%5, %c0] : memref<4096x128xf32, #tpu.memory_space<vmem>>, vector<512x128xf32>
    %c0_1 = arith.constant 0 : index
    %c0_2 = arith.constant 0 : index
    %7 = vector.load %arg5[%c0_1, %c0_2] : memref<128x128xf32, #tpu.memory_space<vmem>>, vector<128x128xf32>
    %c0_3 = arith.constant 0 : index
    %c0_4 = arith.constant 0 : index
    %8 = vector.load %arg2[%c0_3, %c0_4] : memref<128x512xbf16, #tpu.memory_space<vmem>>, vector<128x512xbf16>
    %9 = arith.extf %8 : vector<128x512xbf16> to vector<128x512xf32>
    %cst = arith.constant dense<0.000000e+00> : vector<128x128xf32>
    %10 = tpu.matmul %9, %6, %cst {dimension_numbers = #tpu.dot_dimension_numbers<[1], [0], [0], [1], [0, 0, 1, 1], [], []>} : vector<128x512xf32>, vector<512x128xf32>, vector<128x128xf32> -> vector<128x128xf32>
    %11 = arith.addf %7, %10 : vector<128x128xf32>
    %c0_5 = arith.constant 0 : index
    %c0_6 = arith.constant 0 : index
    %12 = vector.load %arg5[%c0_5, %c0_6] : memref<128x128xf32, #tpu.memory_space<vmem>>, vector<128x128xf32>
    tpu.vector_store %arg5[%c0_5, %c0_6], %11 {strides = array<i32>} : memref<128x128xf32, #tpu.memory_space<vmem>>, vector<128x128xf32>,
    %c7_i32 = arith.constant 7 : i32
    %13 = arith.cmpi eq, %arg1, %c7_i32 : i32
    %14 = arith.extui %13 : i1 to i32
    %c0_i32_7 = arith.constant 0 : i32
    %15 = arith.cmpi ne, %14, %c0_i32_7 : i32
    scf.if %15 {
      %c0_8 = arith.constant 0 : index
      %c0_9 = arith.constant 0 : index
      %16 = vector.load %arg5[%c0_8, %c0_9] : memref<128x128xf32, #tpu.memory_space<vmem>>, vector<128x128xf32>
      %c0_10 = arith.constant 0 : index
      %c0_11 = arith.constant 0 : index
      %17 = vector.load %arg4[%c0_10, %c0_11] : memref<128x128xf32, #tpu.memory_space<vmem>>, vector<128x128xf32>
      tpu.vector_store %arg4[%c0_10, %c0_11], %16 {strides = array<i32>} : memref<128x128xf32, #tpu.memory_space<vmem>>, vector<128x128xf32>,
    } else {
    }
    return
  }
  func.func @transform_0(%arg0: i32, %arg1: i32) -> (i32, i32) {
    %c0_i32 = arith.constant 0 : i32
    return %arg0, %arg1 : i32, i32
  }
  func.func @transform_1(%arg0: i32, %arg1: i32) -> (i32, i32) {
    %c0_i32 = arith.constant 0 : i32
    %c0_i32_0 = arith.constant 0 : i32
    %c0_i32_1 = arith.constant 0 : i32
    return %c0_i32, %c0_i32_0 : i32, i32
  }
  func.func @transform_2(%arg0: i32, %arg1: i32) -> (i32, i32) {
    %c0_i32 = arith.constant 0 : i32
    %c0_i32_0 = arith.constant 0 : i32
    return %arg0, %c0_i32 : i32, i32
  }
}

module attributes {stable_mosaic.version = 11 : i64} {
  func.func @_layer1_kernel(%arg0: i32, %arg1: memref<128x128xf32, #tpu.memory_space<vmem>>, %arg2: memref<128x128xf32, #tpu.memory_space<vmem>>, %arg3: memref<1x128xf32, #tpu.memory_space<vmem>>, %arg4: memref<128x128xf32, #tpu.memory_space<vmem>>, %arg5: memref<128x128xf32, #tpu.memory_space<vmem>>) attributes {dimension_semantics = [#tpu.dimension_semantics<parallel>], iteration_bounds = array<i64: 1>, scalar_prefetch = 0 : i64, scratch_operands = 0 : i64, tpu.core_type = #tpu.core_type<tc>, window_params = [{transform_indices = @transform_0, window_bounds = array<i64: 128, 128>}, {pipeline_mode = #tpu.pipeline_mode<synchronous>, transform_indices = @transform_1, window_bounds = array<i64: 128, 128>}, {pipeline_mode = #tpu.pipeline_mode<synchronous>, transform_indices = @transform_2, window_bounds = array<i64: 1, 128>}, {pipeline_mode = #tpu.pipeline_mode<synchronous>, transform_indices = @transform_3, window_bounds = array<i64: 128, 128>}, {transform_indices = @transform_4, window_bounds = array<i64: 128, 128>}]} {
    %c0 = arith.constant 0 : index
    %c0_0 = arith.constant 0 : index
    %0 = vector.load %arg1[%c0, %c0_0] : memref<128x128xf32, #tpu.memory_space<vmem>>, vector<128x128xf32>
    %c0_1 = arith.constant 0 : index
    %c0_2 = arith.constant 0 : index
    %1 = vector.load %arg2[%c0_1, %c0_2] : memref<128x128xf32, #tpu.memory_space<vmem>>, vector<128x128xf32>
    %cst = arith.constant dense<0.000000e+00> : vector<128x128xf32>
    %2 = tpu.matmul %0, %1, %cst {dimension_numbers = #tpu.dot_dimension_numbers<[1], [0], [0], [1], [0, 0, 1, 1], [], []>} : vector<128x128xf32>, vector<128x128xf32>, vector<128x128xf32> -> vector<128x128xf32>
    %c0_3 = arith.constant 0 : index
    %c0_4 = arith.constant 0 : index
    %3 = vector.load %arg3[%c0_3, %c0_4] : memref<1x128xf32, #tpu.memory_space<vmem>>, vector<1x128xf32>
    %4 = vector.broadcast %3 : vector<1x128xf32> to vector<128x128xf32>
    %5 = arith.addf %2, %4 : vector<128x128xf32>
    %cst_5 = arith.constant 0.000000e+00 : f32
    %6 = vector.broadcast %cst_5 : f32 to vector<128x128xf32>
    %7 = arith.maximumf %5, %6 : vector<128x128xf32>
    %c0_6 = arith.constant 0 : index
    %c0_7 = arith.constant 0 : index
    %8 = vector.load %arg4[%c0_6, %c0_7] : memref<128x128xf32, #tpu.memory_space<vmem>>, vector<128x128xf32>
    %cst_8 = arith.constant dense<0.000000e+00> : vector<128x128xf32>
    %9 = tpu.matmul %7, %8, %cst_8 {dimension_numbers = #tpu.dot_dimension_numbers<[1], [0], [0], [1], [0, 0, 1, 1], [], []>} : vector<128x128xf32>, vector<128x128xf32>, vector<128x128xf32> -> vector<128x128xf32>
    %c0_9 = arith.constant 0 : index
    %c0_10 = arith.constant 0 : index
    %10 = vector.load %arg5[%c0_9, %c0_10] : memref<128x128xf32, #tpu.memory_space<vmem>>, vector<128x128xf32>
    tpu.vector_store %arg5[%c0_9, %c0_10], %9 {strides = array<i32>} : memref<128x128xf32, #tpu.memory_space<vmem>>, vector<128x128xf32>,
    return
  }
  func.func @transform_0(%arg0: i32) -> (i32, i32) {
    %c0_i32 = arith.constant 0 : i32
    %c0_i32_0 = arith.constant 0 : i32
    return %arg0, %c0_i32 : i32, i32
  }
  func.func @transform_1(%arg0: i32) -> (i32, i32) {
    %c0_i32 = arith.constant 0 : i32
    %c0_i32_0 = arith.constant 0 : i32
    %c0_i32_1 = arith.constant 0 : i32
    return %c0_i32, %c0_i32_0 : i32, i32
  }
  func.func @transform_2(%arg0: i32) -> (i32, i32) {
    %c0_i32 = arith.constant 0 : i32
    %c0_i32_0 = arith.constant 0 : i32
    %c0_i32_1 = arith.constant 0 : i32
    return %c0_i32, %c0_i32_0 : i32, i32
  }
  func.func @transform_3(%arg0: i32) -> (i32, i32) {
    %c0_i32 = arith.constant 0 : i32
    %c0_i32_0 = arith.constant 0 : i32
    %c0_i32_1 = arith.constant 0 : i32
    return %c0_i32, %c0_i32_0 : i32, i32
  }
  func.func @transform_4(%arg0: i32) -> (i32, i32) {
    %c0_i32 = arith.constant 0 : i32
    %c0_i32_0 = arith.constant 0 : i32
    return %arg0, %c0_i32 : i32, i32
  }
}

module attributes {stable_mosaic.version = 11 : i64} {
  func.func @_layer2_kernel(%arg0: i32, %arg1: memref<128x128xf32, #tpu.memory_space<vmem>>, %arg2: memref<128x128xf32, #tpu.memory_space<vmem>>, %arg3: memref<1x128xf32, #tpu.memory_space<vmem>>, %arg4: memref<128x128xf32, #tpu.memory_space<vmem>>) attributes {dimension_semantics = [#tpu.dimension_semantics<parallel>], iteration_bounds = array<i64: 1>, scalar_prefetch = 0 : i64, scratch_operands = 0 : i64, tpu.core_type = #tpu.core_type<tc>, window_params = [{transform_indices = @transform_0, window_bounds = array<i64: 128, 128>}, {pipeline_mode = #tpu.pipeline_mode<synchronous>, transform_indices = @transform_1, window_bounds = array<i64: 128, 128>}, {pipeline_mode = #tpu.pipeline_mode<synchronous>, transform_indices = @transform_2, window_bounds = array<i64: 1, 128>}, {transform_indices = @transform_3, window_bounds = array<i64: 128, 128>}]} {
    %c0 = arith.constant 0 : index
    %c0_0 = arith.constant 0 : index
    %0 = vector.load %arg1[%c0, %c0_0] : memref<128x128xf32, #tpu.memory_space<vmem>>, vector<128x128xf32>
    %c0_1 = arith.constant 0 : index
    %c0_2 = arith.constant 0 : index
    %1 = vector.load %arg2[%c0_1, %c0_2] : memref<128x128xf32, #tpu.memory_space<vmem>>, vector<128x128xf32>
    %cst = arith.constant dense<0.000000e+00> : vector<128x128xf32>
    %2 = tpu.matmul %0, %1, %cst {dimension_numbers = #tpu.dot_dimension_numbers<[1], [0], [0], [1], [0, 0, 1, 1], [], []>} : vector<128x128xf32>, vector<128x128xf32>, vector<128x128xf32> -> vector<128x128xf32>
    %c0_3 = arith.constant 0 : index
    %c0_4 = arith.constant 0 : index
    %3 = vector.load %arg3[%c0_3, %c0_4] : memref<1x128xf32, #tpu.memory_space<vmem>>, vector<1x128xf32>
    %4 = vector.broadcast %3 : vector<1x128xf32> to vector<128x128xf32>
    %5 = arith.addf %2, %4 : vector<128x128xf32>
    %c0_5 = arith.constant 0 : index
    %c0_6 = arith.constant 0 : index
    %6 = vector.load %arg4[%c0_5, %c0_6] : memref<128x128xf32, #tpu.memory_space<vmem>>, vector<128x128xf32>
    tpu.vector_store %arg4[%c0_5, %c0_6], %5 {strides = array<i32>} : memref<128x128xf32, #tpu.memory_space<vmem>>, vector<128x128xf32>,
    return
  }
  func.func @transform_0(%arg0: i32) -> (i32, i32) {
    %c0_i32 = arith.constant 0 : i32
    %c0_i32_0 = arith.constant 0 : i32
    return %arg0, %c0_i32 : i32, i32
  }
  func.func @transform_1(%arg0: i32) -> (i32, i32) {
    %c0_i32 = arith.constant 0 : i32
    %c0_i32_0 = arith.constant 0 : i32
    %c0_i32_1 = arith.constant 0 : i32
    return %c0_i32, %c0_i32_0 : i32, i32
  }
  func.func @transform_2(%arg0: i32) -> (i32, i32) {
    %c0_i32 = arith.constant 0 : i32
    %c0_i32_0 = arith.constant 0 : i32
    %c0_i32_1 = arith.constant 0 : i32
    return %c0_i32, %c0_i32_0 : i32, i32
  }
  func.func @transform_3(%arg0: i32) -> (i32, i32) {
    %c0_i32 = arith.constant 0 : i32
    %c0_i32_0 = arith.constant 0 : i32
    return %arg0, %c0_i32 : i32, i32
  }
}

</mosaic_0001>

<bundles_post_ra>
// kernel: gcn_forward.3
= control target key start
LH: loop header
LB: loop body
LE: loop exit
PB: predicated region body
PF: predicated region fallthrough
CT: control target
= control target key end

     0   :  { %s1212_s9 = smov 0   ;;  %s1214_s10 = smov 0   ;;  %s1503_s0 = inlined_call_operand.vmem [shape: bf16[128,4096], index: 0, kind: input, shape index: {}]   ;;  %s1504_s1 = inlined_call_operand.vmem [shape: f32[4096,128], index: 1, kind: input, shape index: {}]   ;;  %s1505_s2 = inlined_call_operand.vmem [shape: f32[128,128], index: 2, kind: output, shape index: {}]  }
   0x1   :  { %s1216_s11 = smov 0   ;;  %s1218_s12 = smov 0  }
   0x2   :  { %s1220_s13 = smov 0  }
   0x3 LB: > { %s21_s14 = sadd.s32 1, %s1190_s12  ;;  %p40_p1 = scmp.ne.s32.totalorder %s1182_s10, %s1178_s9  ;;  %s1194_s13 = sphi %s1220_s13, %s12_s13   ;;  %s1190_s12 = sphi %s1218_s12, %s1509_s12   ;;  %s1186_s11 = sphi %s1216_s11, %s1508_s11   ;;  %s1182_s10 = sphi %s1214_s10, %s1507_s10   ;;  %s1178_s9 = sphi %s1212_s9, %s1506_s9  }
   0x4   : > { %p22_p0 = scmp.ge.s32.totalorder %s21_s14, 8  ;;  %p41_p2 = scmp.eq.s32.totalorder %s1194_s13, 0 }
   0x5   : > { %s33_s16 = sadd.s32 1, %s1182_s10  ;;  %p877_p5 = scmp.ge.s32.totalorder %s1194_s13, 8 }
   0x6   : > { %s1511_s14 = smov (%p22_p0, %s21_s14), 0  ;;  %p42_p3 = por %p41_p2, %p40_p1 }
   0x7   : > { %s29_s15 = ssub.s32 %s1190_s12, %s1511_s14  ;;  %116 = sbr.rel (%p877_p5) target bundleno = 34 (0x22), region = 20 }
   0x8   : > { %p31_p4 = scmp.eq.s32.totalorder %s29_s15, 0 }
   0xa   : > { %s1247_s17 = scalar_select %p31_p4, %s1182_s10, %s33_s16  }
   0xe   : > { %119 = sbr.rel (!%p42_p3) target bundleno = 34 (0x22), region = 24  ;;  %s121_s18 = sand.u32 (%p42_p3), 1, %s1182_s10  }
   0xf   : > { %s890_s19 = sshll.u32 (%p42_p3), %s1190_s12, 4  ;;  %s878_s20 = sshll.u32 (%p42_p3), %s121_s18, 8 }
  0x10   : > { %s1255_s23 = scalar_lea.vmem (%p42_p3), %s1503_s0, %s890_s19  ;;  %s1260_s24 = scalar_lea.vmem (%p42_p3), [#allocation3], %s878_s20 }
  0x11   : > { %v142_v0 = vld [vmem:[%s1255_s23] sm:$0xff] (%p42_p3)  ;;  %v144_v1 = vld [vmem:[%s1255_s23 + $0x8] sm:$0xff] (%p42_p3) }
  0x12   : > { %v146_v2 = vld [vmem:[%s1255_s23 + $0x80] sm:$0xff] (%p42_p3)  ;;  %143 = vst [vmem:[%s1260_s24] sm:$0xff] (%p42_p3), %v142_v0  ;;  %145 = vst [vmem:[%s1260_s24 + $0x8] sm:$0xff] (%p42_p3), %v144_v1  ;;  %v148_v3 = vld [vmem:[%s1255_s23 + $0x88] sm:$0xff] (%p42_p3) }
  0x13   : > { %147 = vst [vmem:[%s1260_s24 + $0x10] sm:$0xff] (%p42_p3), %v146_v2  ;;  %v150_v4 = vld [vmem:[%s1255_s23 + $0x100] sm:$0xff] (%p42_p3)  ;;  %v152_v5 = vld [vmem:[%s1255_s23 + $0x108] sm:$0xff] (%p42_p3)  ;;  %149 = vst [vmem:[%s1260_s24 + $0x18] sm:$0xff] (%p42_p3), %v148_v3 }
  0x14   : > { %151 = vst [vmem:[%s1260_s24 + $0x20] sm:$0xff] (%p42_p3), %v150_v4  ;;  %153 = vst [vmem:[%s1260_s24 + $0x28] sm:$0xff] (%p42_p3), %v152_v5  ;;  %v154_v6 = vld [vmem:[%s1255_s23 + $0x180] sm:$0xff] (%p42_p3)  ;;  %v156_v7 = vld [vmem:[%s1255_s23 + $0x188] sm:$0xff] (%p42_p3) }
  0x15   : > { %v158_v8 = vld [vmem:[%s1255_s23 + $0x200] sm:$0xff]  ;;  %155 = vst [vmem:[%s1260_s24 + $0x30] sm:$0xff] %v154_v6  ;;  %157 = vst [vmem:[%s1260_s24 + $0x38] sm:$0xff] %v156_v7  ;;  %v160_v9 = vld [vmem:[%s1255_s23 + $0x208] sm:$0xff] }
  0x16   : > { %159 = vst [vmem:[%s1260_s24 + $0x40] sm:$0xff] %v158_v8  ;;  %v162_v10 = vld [vmem:[%s1255_s23 + $0x280] sm:$0xff]  ;;  %v164_v11 = vld [vmem:[%s1255_s23 + $0x288] sm:$0xff]  ;;  %161 = vst [vmem:[%s1260_s24 + $0x48] sm:$0xff] %v160_v9 }
  0x17   : > { %163 = vst [vmem:[%s1260_s24 + $0x50] sm:$0xff] %v162_v10  ;;  %165 = vst [vmem:[%s1260_s24 + $0x58] sm:$0xff] %v164_v11  ;;  %v166_v12 = vld [vmem:[%s1255_s23 + $0x300] sm:$0xff]  ;;  %v168_v13 = vld [vmem:[%s1255_s23 + $0x308] sm:$0xff] }
  0x18   : > { %v170_v14 = vld [vmem:[%s1255_s23 + $0x380] sm:$0xff]  ;;  %167 = vst [vmem:[%s1260_s24 + $0x60] sm:$0xff] %v166_v12  ;;  %169 = vst [vmem:[%s1260_s24 + $0x68] sm:$0xff] %v168_v13  ;;  %v172_v15 = vld [vmem:[%s1255_s23 + $0x388] sm:$0xff] }
  0x19   : > { %171 = vst [vmem:[%s1260_s24 + $0x70] sm:$0xff] %v170_v14  ;;  %v174_v16 = vld [vmem:[%s1255_s23 + $0x400] sm:$0xff]  ;;  %v176_v17 = vld [vmem:[%s1255_s23 + $0x408] sm:$0xff]  ;;  %173 = vst [vmem:[%s1260_s24 + $0x78] sm:$0xff] %v172_v15 }
  0x1a   : > { %175 = vst [vmem:[%s1260_s24 + $0x80] sm:$0xff] %v174_v16  ;;  %177 = vst [vmem:[%s1260_s24 + $0x88] sm:$0xff] %v176_v17  ;;  %v178_v18 = vld [vmem:[%s1255_s23 + $0x480] sm:$0xff]  ;;  %v180_v19 = vld [vmem:[%s1255_s23 + $0x488] sm:$0xff] }
  0x1b   : > { %v182_v20 = vld [vmem:[%s1255_s23 + $0x500] sm:$0xff]  ;;  %179 = vst [vmem:[%s1260_s24 + $0x90] sm:$0xff] %v178_v18  ;;  %181 = vst [vmem:[%s1260_s24 + $0x98] sm:$0xff] %v180_v19  ;;  %v184_v21 = vld [vmem:[%s1255_s23 + $0x508] sm:$0xff] }
  0x1c   : > { %183 = vst [vmem:[%s1260_s24 + $0xa0] sm:$0xff] %v182_v20  ;;  %v186_v22 = vld [vmem:[%s1255_s23 + $0x580] sm:$0xff]  ;;  %v188_v23 = vld [vmem:[%s1255_s23 + $0x588] sm:$0xff]  ;;  %185 = vst [vmem:[%s1260_s24 + $0xa8] sm:$0xff] %v184_v21 }
  0x1d   : > { %187 = vst [vmem:[%s1260_s24 + $0xb0] sm:$0xff] %v186_v22  ;;  %189 = vst [vmem:[%s1260_s24 + $0xb8] sm:$0xff] %v188_v23  ;;  %v190_v24 = vld [vmem:[%s1255_s23 + $0x600] sm:$0xff]  ;;  %v192_v25 = vld [vmem:[%s1255_s23 + $0x608] sm:$0xff] }
  0x1e   : > { %v194_v26 = vld [vmem:[%s1255_s23 + $0x680] sm:$0xff]  ;;  %191 = vst [vmem:[%s1260_s24 + $0xc0] sm:$0xff] %v190_v24  ;;  %193 = vst [vmem:[%s1260_s24 + $0xc8] sm:$0xff] %v192_v25  ;;  %v196_v27 = vld [vmem:[%s1255_s23 + $0x688] sm:$0xff] }
  0x1f   : > { %195 = vst [vmem:[%s1260_s24 + $0xd0] sm:$0xff] %v194_v26  ;;  %v198_v28 = vld [vmem:[%s1255_s23 + $0x700] sm:$0xff]  ;;  %v200_v29 = vld [vmem:[%s1255_s23 + $0x708] sm:$0xff]  ;;  %197 = vst [vmem:[%s1260_s24 + $0xd8] sm:$0xff] %v196_v27 }
  0x20   : > { %199 = vst [vmem:[%s1260_s24 + $0xe0] sm:$0xff] %v198_v28  ;;  %201 = vst [vmem:[%s1260_s24 + $0xe8] sm:$0xff] %v200_v29  ;;  %v202_v30 = vld [vmem:[%s1255_s23 + $0x780] sm:$0xff]  ;;  %v204_v31 = vld [vmem:[%s1255_s23 + $0x788] sm:$0xff] }
  0x21   : > { %203 = vst [vmem:[%s1260_s24 + $0xf0] sm:$0xff] %v202_v30  ;;  %205 = vst [vmem:[%s1260_s24 + $0xf8] sm:$0xff] %v204_v31 }
  0x22 PF: > { %p881_p6 = scmp.ge.s32.totalorder %s1194_s13, 1  ;;  %p210_p7 = scmp.lt.s32.totalorder %s1194_s13, 9 }
  0x24   : > { %p211_p8 = pnand %p881_p6, %p210_p7 }
  0x25   : > { %s217_s25 = sand.u32 (!%p211_p8), 1, %s1178_s9   ;;  %p883_p9 = scmp.ne.s32.totalorder (!%p211_p8), %s1186_s11, 0 }
  0x26   : > { %214 = sbr.rel (%p211_p8) target bundleno = 381 (0x17d), region = 47  ;;  %s882_s26 = sshll.u32 (!%p211_p8), %s217_s25, 8 }
  0x27   : > { %s1326_s27 = scalar_lea.vmem (!%p211_p8), [#allocation3], %s882_s26 }
  0x2d   : > { %249 = sbr.rel (%p883_p9) target bundleno = 54 (0x36), region = 55  ;;  %v1196_v32 = vmov (!%p883_p9), 0.0  }
  0x2e   : > { %250 = vst [vmem:[#allocation2] sm:$0xff] (!%p883_p9), %v1196_v32  ;;  %251 = vst [vmem:[#allocation2 + $0x8] sm:$0xff] (!%p883_p9), %v1196_v32 }
  0x2f   : > { %252 = vst [vmem:[#allocation2 + $0x10] sm:$0xff] (!%p883_p9), %v1196_v32  ;;  %253 = vst [vmem:[#allocation2 + $0x18] sm:$0xff] (!%p883_p9), %v1196_v32 }
  0x30   : > { %254 = vst [vmem:[#allocation2 + $0x20] sm:$0xff] (!%p883_p9), %v1196_v32  ;;  %255 = vst [vmem:[#allocation2 + $0x28] sm:$0xff] (!%p883_p9), %v1196_v32 }
  0x31   : > { %256 = vst [vmem:[#allocation2 + $0x30] sm:$0xff] (!%p883_p9), %v1196_v32  ;;  %257 = vst [vmem:[#allocation2 + $0x38] sm:$0xff] (!%p883_p9), %v1196_v32 }
  0x32   : > { %258 = vst [vmem:[#allocation2 + $0x40] sm:$0xff] (!%p883_p9), %v1196_v32  ;;  %259 = vst [vmem:[#allocation2 + $0x48] sm:$0xff] (!%p883_p9), %v1196_v32 }
  0x33   : > { %260 = vst [vmem:[#allocation2 + $0x50] sm:$0xff] (!%p883_p9), %v1196_v32  ;;  %261 = vst [vmem:[#allocation2 + $0x58] sm:$0xff] (!%p883_p9), %v1196_v32 }
  0x34   : > { %262 = vst [vmem:[#allocation2 + $0x60] sm:$0xff] %v1196_v32  ;;  %263 = vst [vmem:[#allocation2 + $0x68] sm:$0xff] %v1196_v32 }
  0x35   : > { %264 = vst [vmem:[#allocation2 + $0x70] sm:$0xff] %v1196_v32  ;;  %265 = vst [vmem:[#allocation2 + $0x78] sm:$0xff] %v1196_v32 }
  0x36 PF: > { %s884_s28 = sshll.u32 %s1186_s11, 9  ;;  %v1331_v33 = vld [vmem:[%s1326_s27] sm:$0xff]  ;;  %v1334_v34 = vld [vmem:[%s1326_s27 + $0x8] sm:$0xff]  ;;  %p885_p10 = scmp.ne.s32.totalorder %s1186_s11, 7 }
  0x37   : > { %s1339_s3 = scalar_lea.vmem %s1504_s1, %s884_s28  ;;  %v381_v35 = vunpack.c.h.bf16 %v1331_v33  ;;  %v383_v36 = vunpack.c.h.bf16 %v1334_v34 }
  0x38   : > { %v284_v37 = vld [vmem:[%s1339_s3 + $0x80] sm:$0xff]  ;;  %v285_v38 = vld [vmem:[%s1339_s3 + $0x88] sm:$0xff]  ;;  %v286_v48 = vld [vmem:[%s1339_s3 + $0x90] sm:$0xff] }
  0x39   : > { %v316_v39 = vld [vmem:[%s1339_s3 + $0x180] sm:$0xff]  ;;  %v1051_v40 = vpack.c.bf16 %v285_v38, %v284_v37  ;;  %v317_v41 = vld [vmem:[%s1339_s3 + $0x188] sm:$0xff]  ;;  %508 = vmatprep.mubr.f32.mxu0 %v381_v35  ;;  %653 = vmatprep.mubr.f32.mxu1 %v383_v36  ;;  %v287_v50 = vld [vmem:[%s1339_s3 + $0x98] sm:$0xff] }
  0x3a   : > { %v268_v42 = vld [vmem:[%s1339_s3] sm:$0xff]  ;;  %v269_v43 = vld [vmem:[%s1339_s3 + $0x8] sm:$0xff]  ;;  %v1083_v44 = vpack.c.bf16 %v317_v41, %v316_v39  ;;  %v318_v51 = vld [vmem:[%s1339_s3 + $0x190] sm:$0xff]  ;;  %v1055_v53 = vpack.c.bf16 %v287_v50, %v286_v48 }
  0x3b   : > { %v1053_v45 = vpack.c.bf16 %v269_v43, %v268_v42  ;;  %v300_v46 = vld [vmem:[%s1339_s3 + $0x100] sm:$0xff]  ;;  %v301_v47 = vld [vmem:[%s1339_s3 + $0x108] sm:$0xff]  ;;  %1052 = vmatprep.subr.bf16.mxu0 %v1051_v40  ;;  %v319_v52 = vld [vmem:[%s1339_s3 + $0x198] sm:$0xff] }
  0x3c   : > { %v1085_v49 = vpack.c.bf16 %v301_v47, %v300_v46  ;;  %1084 = vmatprep.subr.bf16.mxu1 %v1083_v44  ;;  %v1087_v54 = vpack.c.bf16 %v319_v52, %v318_v51  ;;  %v270_v55 = vld [vmem:[%s1339_s3 + $0x10] sm:$0xff]  ;;  %v271_v56 = vld [vmem:[%s1339_s3 + $0x18] sm:$0xff]  ;;  %v288_v60 = vld [vmem:[%s1339_s3 + $0xa0] sm:$0xff] }
  0x3d   : > { %1054 = vmatpush3.bf16.msra.mxu0 %v1053_v45  ;;  %v302_v57 = vld [vmem:[%s1339_s3 + $0x110] sm:$0xff]  ;;  %v1057_v58 = vpack.c.bf16 %v271_v56, %v270_v55  ;;  %v303_v59 = vld [vmem:[%s1339_s3 + $0x118] sm:$0xff]  ;;  %v289_v61 = vld [vmem:[%s1339_s3 + $0xa8] sm:$0xff] }
  0x3e   : > { %1086 = vmatpush3.bf16.msra.mxu1 %v1085_v49  ;;  %1056 = vmatprep.subr.bf16.mxu0 %v1055_v53  ;;  %v1089_v62 = vpack.c.bf16 %v303_v59, %v302_v57  ;;  %v1059_v63 = vpack.c.bf16 %v289_v61, %v288_v60  ;;  %v320_v0 = vld [vmem:[%s1339_s3 + $0x1a0] sm:$0xff]  ;;  %v321_v1 = vld [vmem:[%s1339_s3 + $0x1a8] sm:$0xff]  ;;  %v290_v8 = vld [vmem:[%s1339_s3 + $0xb0] sm:$0xff] }
  0x3f   : > { %1088 = vmatprep.subr.bf16.mxu1 %v1087_v54  ;;  %v272_v2 = vld [vmem:[%s1339_s3 + $0x20] sm:$0xff]  ;;  %v1091_v3 = vpack.c.bf16 %v321_v1, %v320_v0  ;;  %v273_v4 = vld [vmem:[%s1339_s3 + $0x28] sm:$0xff]  ;;  %v291_v9 = vld [vmem:[%s1339_s3 + $0xb8] sm:$0xff] }
  0x40   : > { %v304_v5 = vld [vmem:[%s1339_s3 + $0x120] sm:$0xff]  ;;  %v305_v6 = vld [vmem:[%s1339_s3 + $0x128] sm:$0xff]  ;;  %v1061_v7 = vpack.c.bf16 %v273_v4, %v272_v2  ;;  %v322_v10 = vld [vmem:[%s1339_s3 + $0x1b0] sm:$0xff]  ;;  %v1063_v12 = vpack.c.bf16 %v291_v9, %v290_v8  ;;  %v380_v9 = vunpack.c.l.bf16 %v1331_v33 }
  0x41   : > { %1058 = vmatpush3.bf16.msra.mxu0 %v1057_v58  ;;  %v1093_v11 = vpack.c.bf16 %v305_v6, %v304_v5  ;;  %v323_v13 = vld [vmem:[%s1339_s3 + $0x1b8] sm:$0xff]  ;;  %v274_v14 = vld [vmem:[%s1339_s3 + $0x30] sm:$0xff]  ;;  %v292_v19 = vld [vmem:[%s1339_s3 + $0xc0] sm:$0xff] }
  0x42   : > { %1090 = vmatpush3.bf16.msra.mxu1 %v1089_v62  ;;  %1060 = vmatprep.subr.bf16.mxu0 %v1059_v63  ;;  %v275_v15 = vld [vmem:[%s1339_s3 + $0x38] sm:$0xff]  ;;  %v1095_v16 = vpack.c.bf16 %v323_v13, %v322_v10  ;;  %v306_v17 = vld [vmem:[%s1339_s3 + $0x130] sm:$0xff]  ;;  %v293_v20 = vld [vmem:[%s1339_s3 + $0xc8] sm:$0xff]  ;;  %v382_v10 = vunpack.c.l.bf16 %v1334_v34 }
  0x43   : > { %1092 = vmatprep.subr.bf16.mxu1 %v1091_v3  ;;  %v307_v18 = vld [vmem:[%s1339_s3 + $0x138] sm:$0xff]  ;;  %v324_v21 = vld [vmem:[%s1339_s3 + $0x1c0] sm:$0xff]  ;;  %v325_v22 = vld [vmem:[%s1339_s3 + $0x1c8] sm:$0xff]  ;;  %v1065_v23 = vpack.c.bf16 %v275_v15, %v274_v14  ;;  %v1067_v25 = vpack.c.bf16 %v293_v20, %v292_v19 }
  0x44   : > { %v1097_v24 = vpack.c.bf16 %v307_v18, %v306_v17  ;;  %v276_v26 = vld [vmem:[%s1339_s3 + $0x40] sm:$0xff]  ;;  %v277_v27 = vld [vmem:[%s1339_s3 + $0x48] sm:$0xff]  ;;  %v1099_v29 = vpack.c.bf16 %v325_v22, %v324_v21  ;;  %v294_v31 = vld [vmem:[%s1339_s3 + $0xd0] sm:$0xff] }
  0x45   : > { %1062 = vmatpush3.bf16.msra.mxu0 %v1061_v7  ;;  %v308_v28 = vld [vmem:[%s1339_s3 + $0x140] sm:$0xff]  ;;  %v309_v30 = vld [vmem:[%s1339_s3 + $0x148] sm:$0xff]  ;;  %v295_v32 = vld [vmem:[%s1339_s3 + $0xd8] sm:$0xff]  ;;  %v1069_v37 = vpack.c.bf16 %v277_v27, %v276_v26 }
  0x46   : > { %1094 = vmatpush3.bf16.msra.mxu1 %v1093_v11  ;;  %1064 = vmatprep.subr.bf16.mxu0 %v1063_v12  ;;  %v326_v35 = vld [vmem:[%s1339_s3 + $0x1d0] sm:$0xff]  ;;  %v327_v36 = vld [vmem:[%s1339_s3 + $0x1d8] sm:$0xff]  ;;  %v1101_v38 = vpack.c.bf16 %v309_v30, %v308_v28  ;;  %v1071_v39 = vpack.c.bf16 %v295_v32, %v294_v31  ;;  %v296_v45 = vld [vmem:[%s1339_s3 + $0xe0] sm:$0xff] }
  0x47   : > { %1096 = vmatprep.subr.bf16.mxu1 %v1095_v16  ;;  %v278_v40 = vld [vmem:[%s1339_s3 + $0x50] sm:$0xff]  ;;  %v279_v41 = vld [vmem:[%s1339_s3 + $0x58] sm:$0xff]  ;;  %v1103_v43 = vpack.c.bf16 %v327_v36, %v326_v35  ;;  %v297_v46 = vld [vmem:[%s1339_s3 + $0xe8] sm:$0xff] }
  0x48   : > { %v310_v42 = vld [vmem:[%s1339_s3 + $0x150] sm:$0xff]  ;;  %v311_v44 = vld [vmem:[%s1339_s3 + $0x158] sm:$0xff]  ;;  %v328_v47 = vld [vmem:[%s1339_s3 + $0x1e0] sm:$0xff]  ;;  %v1073_v49 = vpack.c.bf16 %v279_v41, %v278_v40  ;;  %v1075_v51 = vpack.c.bf16 %v297_v46, %v296_v45 }
  0x49   : > { %1066 = vmatpush3.bf16.msra.mxu0 %v1065_v23  ;;  %v329_v48 = vld [vmem:[%s1339_s3 + $0x1e8] sm:$0xff]  ;;  %v1105_v50 = vpack.c.bf16 %v311_v44, %v310_v42  ;;  %v280_v52 = vld [vmem:[%s1339_s3 + $0x60] sm:$0xff]  ;;  %v298_v57 = vld [vmem:[%s1339_s3 + $0xf0] sm:$0xff] }
  0x4a   : > { %1098 = vmatpush3.bf16.msra.mxu1 %v1097_v24  ;;  %1068 = vmatprep.subr.bf16.mxu0 %v1067_v25  ;;  %v281_v53 = vld [vmem:[%s1339_s3 + $0x68] sm:$0xff]  ;;  %v312_v54 = vld [vmem:[%s1339_s3 + $0x160] sm:$0xff]  ;;  %v1107_v55 = vpack.c.bf16 %v329_v48, %v328_v47  ;;  %v299_v58 = vld [vmem:[%s1339_s3 + $0xf8] sm:$0xff] }
  0x4b   : > { %1100 = vmatprep.subr.bf16.mxu1 %v1099_v29  ;;  %v313_v56 = vld [vmem:[%s1339_s3 + $0x168] sm:$0xff]  ;;  %v330_v59 = vld [vmem:[%s1339_s3 + $0x1f0] sm:$0xff]  ;;  %v331_v60 = vld [vmem:[%s1339_s3 + $0x1f8] sm:$0xff]  ;;  %v1077_v61 = vpack.c.bf16 %v281_v53, %v280_v52  ;;  %v1079_v63 = vpack.c.bf16 %v299_v58, %v298_v57 }
  0x4c   : > { %v1109_v62 = vpack.c.bf16 %v313_v56, %v312_v54  ;;  %v282_v0 = vld [vmem:[%s1339_s3 + $0x70] sm:$0xff]  ;;  %v283_v1 = vld [vmem:[%s1339_s3 + $0x78] sm:$0xff]  ;;  %v1111_v2 = vpack.c.bf16 %v331_v60, %v330_v59  ;;  %v352_v13 = vld [vmem:[%s1326_s27 + $0x20] sm:$0xff] }
  0x4d   : > { %1070 = vmatpush3.bf16.msra.mxu0 %v1069_v37  ;;  %v314_v3 = vld [vmem:[%s1339_s3 + $0x170] sm:$0xff]  ;;  %v315_v4 = vld [vmem:[%s1339_s3 + $0x178] sm:$0xff]  ;;  %v1081_v5 = vpack.c.bf16 %v283_v1, %v282_v0  ;;  %v353_v14 = vld [vmem:[%s1326_s27 + $0x28] sm:$0xff]  ;;  %v389_v17 = vunpack.c.h.bf16 %v352_v13  ;;  %v388_v20 = vunpack.c.l.bf16 %v352_v13 }
  0x4e   : > { %1102 = vmatpush3.bf16.msra.mxu1 %v1101_v38  ;;  %1072 = vmatprep.subr.bf16.mxu0 %v1071_v39  ;;  %v1113_v6 = vpack.c.bf16 %v315_v4, %v314_v3  ;;  %v350_v7 = vld [vmem:[%s1326_s27 + $0x10] sm:$0xff]  ;;  %v351_v8 = vld [vmem:[%s1326_s27 + $0x18] sm:$0xff]  ;;  %v391_v33 = vunpack.c.h.bf16 %v353_v14  ;;  %v390_v34 = vunpack.c.l.bf16 %v353_v14  ;;  %v356_v23 = vld [vmem:[%s1326_s27 + $0x40] sm:$0xff] }
  0x4f   : > { %1104 = vmatprep.subr.bf16.mxu1 %v1103_v43  ;;  %v385_v11 = vunpack.c.h.bf16 %v350_v7  ;;  %v387_v12 = vunpack.c.h.bf16 %v351_v8  ;;  %v384_v15 = vunpack.c.l.bf16 %v350_v7  ;;  %v386_v16 = vunpack.c.l.bf16 %v351_v8  ;;  %v354_v18 = vld [vmem:[%s1326_s27 + $0x30] sm:$0xff]  ;;  %v355_v19 = vld [vmem:[%s1326_s27 + $0x38] sm:$0xff]  ;;  %v357_v24 = vld [vmem:[%s1326_s27 + $0x48] sm:$0xff] }
  0x50   : > { %v393_v21 = vunpack.c.h.bf16 %v354_v18  ;;  %v395_v22 = vunpack.c.h.bf16 %v355_v19  ;;  %v392_v25 = vunpack.c.l.bf16 %v354_v18  ;;  %v394_v26 = vunpack.c.l.bf16 %v355_v19  ;;  %v358_v29 = vld [vmem:[%s1326_s27 + $0x50] sm:$0xff]  ;;  %v359_v30 = vld [vmem:[%s1326_s27 + $0x58] sm:$0xff]  ;;  %v360_v37 = vld [vmem:[%s1326_s27 + $0x60] sm:$0xff] }
  0x51   : > { %1074 = vmatpush3.bf16.msra.mxu0 %v1073_v49  ;;  %v397_v27 = vunpack.c.h.bf16 %v356_v23  ;;  %v399_v28 = vunpack.c.h.bf16 %v357_v24  ;;  %v396_v31 = vunpack.c.l.bf16 %v356_v23  ;;  %v398_v32 = vunpack.c.l.bf16 %v357_v24  ;;  %v361_v38 = vld [vmem:[%s1326_s27 + $0x68] sm:$0xff]  ;;  %v362_v43 = vld [vmem:[%s1326_s27 + $0x70] sm:$0xff]  ;;  %v363_v44 = vld [vmem:[%s1326_s27 + $0x78] sm:$0xff] }
  0x52   : > { %1106 = vmatpush3.bf16.msra.mxu1 %v1105_v50  ;;  %1076 = vmatprep.subr.bf16.mxu0 %v1075_v51  ;;  %v401_v35 = vunpack.c.h.bf16 %v358_v29  ;;  %v403_v36 = vunpack.c.h.bf16 %v359_v30  ;;  %v400_v39 = vunpack.c.l.bf16 %v358_v29  ;;  %v402_v40 = vunpack.c.l.bf16 %v359_v30  ;;  %v364_v49 = vld [vmem:[%s1326_s27 + $0x80] sm:$0xff]  ;;  %v365_v50 = vld [vmem:[%s1326_s27 + $0x88] sm:$0xff]  ;;  %v367_v56 = vld [vmem:[%s1326_s27 + $0x98] sm:$0xff] }
  0x53   : > { %1108 = vmatprep.subr.bf16.mxu1 %v1107_v55  ;;  %v405_v41 = vunpack.c.h.bf16 %v360_v37  ;;  %v407_v42 = vunpack.c.h.bf16 %v361_v38  ;;  %v404_v45 = vunpack.c.l.bf16 %v360_v37  ;;  %v406_v46 = vunpack.c.l.bf16 %v361_v38  ;;  %v366_v55 = vld [vmem:[%s1326_s27 + $0x90] sm:$0xff]  ;;  %v371_v4 = vld [vmem:[%s1326_s27 + $0xb8] sm:$0xff] }
  0x54   : > { %v409_v47 = vunpack.c.h.bf16 %v362_v43  ;;  %v411_v48 = vunpack.c.h.bf16 %v363_v44  ;;  %v408_v51 = vunpack.c.l.bf16 %v362_v43  ;;  %v410_v52 = vunpack.c.l.bf16 %v363_v44  ;;  %v370_v3 = vld [vmem:[%s1326_s27 + $0xb0] sm:$0xff] }
  0x55   : > { %1078 = vmatpush3.bf16.msra.mxu0 %v1077_v61  ;;  %v413_v53 = vunpack.c.h.bf16 %v364_v49  ;;  %v415_v54 = vunpack.c.h.bf16 %v365_v50  ;;  %v412_v57 = vunpack.c.l.bf16 %v364_v49  ;;  %v414_v58 = vunpack.c.l.bf16 %v365_v50  ;;  %v368_v61 = vld [vmem:[%s1326_s27 + $0xa0] sm:$0xff]  ;;  %v333_v50 = vld [vmem:[#allocation2 + $0x8] sm:$0xff] }
  0x56   : > { %1110 = vmatpush3.bf16.msra.mxu1 %v1109_v62  ;;  %1080 = vmatprep.subr.bf16.mxu0 %v1079_v63  ;;  %v417_v59 = vunpack.c.h.bf16 %v366_v55  ;;  %v419_v60 = vunpack.c.h.bf16 %v367_v56  ;;  %v369_v62 = vld [vmem:[%s1326_s27 + $0xa8] sm:$0xff]  ;;  %v416_v63 = vunpack.c.l.bf16 %v366_v55  ;;  %v418_v0 = vunpack.c.l.bf16 %v367_v56 }
  0x57   : > { %1112 = vmatprep.subr.bf16.mxu1 %v1111_v2  ;;  %v421_v1 = vunpack.c.h.bf16 %v368_v61  ;;  %v423_v2 = vunpack.c.h.bf16 %v369_v62  ;;  %v425_v7 = vunpack.c.h.bf16 %v370_v3  ;;  %v427_v8 = vunpack.c.h.bf16 %v371_v4 }
  0x59   : > { %1082 = vmatpush3.bf16.msra.mxu0 %v1081_v5  ;;  %v420_v5 = vunpack.c.l.bf16 %v368_v61 }
  0x5a   : > { %1114 = vmatpush3.bf16.msra.mxu1 %v1113_v6  ;;  %v422_v6 = vunpack.c.l.bf16 %v369_v62 }
  0x5c   : > { %509 = vmatmul.mubr.f32.vlgmr.msra.gmra.mrb[0].mxu0 %v380_v9  ;;  %v372_v9 = vld [vmem:[%s1326_s27 + $0xc0] sm:$0xff] }
  0x5d   : > { %654 = vmatmul.mubr.f32.vlgmr.msra.gmra.mrb[0].mxu1 %v382_v10  ;;  %513 = vmatprep.mubr.f32.mxu0 %v385_v11  ;;  %v373_v10 = vld [vmem:[%s1326_s27 + $0xc8] sm:$0xff]  ;;  %v424_v11 = vunpack.c.l.bf16 %v370_v3  ;;  %v429_v13 = vunpack.c.h.bf16 %v372_v9 }
  0x5e   : > { %658 = vmatprep.mubr.f32.mxu1 %v387_v12  ;;  %v426_v12 = vunpack.c.l.bf16 %v371_v4  ;;  %v431_v14 = vunpack.c.h.bf16 %v373_v10  ;;  %v335_v4 = vld [vmem:[#allocation2 + $0x18] sm:$0xff] }
  0x60   : > { %514 = vmatmul.mubr.f32.gmra.mrb[2].mxu0 %v384_v15  ;;  %v374_v15 = vld [vmem:[%s1326_s27 + $0xd0] sm:$0xff] }
  0x61   : > { %659 = vmatmul.mubr.f32.gmra.mrb[2].mxu1 %v386_v16  ;;  %518 = vmatprep.mubr.f32.mxu0 %v389_v17  ;;  %v375_v16 = vld [vmem:[%s1326_s27 + $0xd8] sm:$0xff]  ;;  %v428_v17 = vunpack.c.l.bf16 %v372_v9  ;;  %v433_v18 = vunpack.c.h.bf16 %v374_v15 }
  0x62   : > { %663 = vmatprep.mubr.f32.mxu1 %v391_v33  ;;  %v430_v33 = vunpack.c.l.bf16 %v373_v10  ;;  %v435_v19 = vunpack.c.h.bf16 %v375_v16 }
  0x64   : > { %519 = vmatmul.mubr.f32.gmra.mrb[4].mxu0 %v388_v20  ;;  %v376_v20 = vld [vmem:[%s1326_s27 + $0xe0] sm:$0xff] }
  0x65   : > { %664 = vmatmul.mubr.f32.gmra.mrb[4].mxu1 %v390_v34  ;;  %523 = vmatprep.mubr.f32.mxu0 %v393_v21  ;;  %v377_v34 = vld [vmem:[%s1326_s27 + $0xe8] sm:$0xff]  ;;  %v432_v21 = vunpack.c.l.bf16 %v374_v15  ;;  %v437_v23 = vunpack.c.h.bf16 %v376_v20 }
  0x66   : > { %668 = vmatprep.mubr.f32.mxu1 %v395_v22  ;;  %v434_v22 = vunpack.c.l.bf16 %v375_v16  ;;  %v439_v24 = vunpack.c.h.bf16 %v377_v34 }
  0x68   : > { %524 = vmatmul.mubr.f32.gmra.mrb[6].mxu0 %v392_v25  ;;  %v378_v25 = vld [vmem:[%s1326_s27 + $0xf0] sm:$0xff] }
  0x69   : > { %669 = vmatmul.mubr.f32.gmra.mrb[6].mxu1 %v394_v26  ;;  %528 = vmatprep.mubr.f32.mxu0 %v397_v27  ;;  %v379_v26 = vld [vmem:[%s1326_s27 + $0xf8] sm:$0xff]  ;;  %v436_v27 = vunpack.c.l.bf16 %v376_v20  ;;  %v441_v29 = vunpack.c.h.bf16 %v378_v25 }
  0x6a   : > { %673 = vmatprep.mubr.f32.mxu1 %v399_v28  ;;  %v438_v28 = vunpack.c.l.bf16 %v377_v34  ;;  %v443_v30 = vunpack.c.h.bf16 %v379_v26  ;;  %v337_v34 = vld [vmem:[#allocation2 + $0x28] sm:$0xff] }
  0x6c   : > { %529 = vmatmul.mubr.f32.gmra.mrb[8].mxu0 %v396_v31  ;;  %v440_v31 = vunpack.c.l.bf16 %v378_v25 }
  0x6d   : > { %674 = vmatmul.mubr.f32.gmra.mrb[8].mxu1 %v398_v32  ;;  %533 = vmatprep.mubr.f32.mxu0 %v401_v35  ;;  %v442_v32 = vunpack.c.l.bf16 %v379_v26 }
  0x6e   : > { %678 = vmatprep.mubr.f32.mxu1 %v403_v36 }
  0x70   : > { %534 = vmatmul.mubr.f32.gmra.mrb[10].mxu0 %v400_v39 }
  0x71   : > { %679 = vmatmul.mubr.f32.gmra.mrb[10].mxu1 %v402_v40  ;;  %538 = vmatprep.mubr.f32.mxu0 %v405_v41  ;;  %v332_v41 = vld [vmem:[#allocation2] sm:$0xff] }
  0x72   : > { %683 = vmatprep.mubr.f32.mxu1 %v407_v42 }
  0x74   : > { %539 = vmatmul.mubr.f32.gmra.mrb[12].mxu0 %v404_v45 }
  0x75   : > { %684 = vmatmul.mubr.f32.gmra.mrb[12].mxu1 %v406_v46  ;;  %543 = vmatprep.mubr.f32.mxu0 %v409_v47 }
  0x76   : > { %688 = vmatprep.mubr.f32.mxu1 %v411_v48 }
  0x78   : > { %544 = vmatmul.mubr.f32.gmra.mrb[14].mxu0 %v408_v51 }
  0x79   : > { %689 = vmatmul.mubr.f32.gmra.mrb[14].mxu1 %v410_v52  ;;  %548 = vmatprep.mubr.f32.mxu0 %v413_v53 }
  0x7a   : > { %693 = vmatprep.mubr.f32.mxu1 %v415_v54 }
  0x7c   : > { %549 = vmatmul.mubr.f32.gmra.mrb[16].mxu0 %v412_v57 }
  0x7d   : > { %694 = vmatmul.mubr.f32.gmra.mrb[16].mxu1 %v414_v58  ;;  %553 = vmatprep.mubr.f32.mxu0 %v417_v59  ;;  %v334_v59 = vld [vmem:[#allocation2 + $0x10] sm:$0xff] }
  0x7e   : > { %698 = vmatprep.mubr.f32.mxu1 %v419_v60 }
  0x80   : > { %554 = vmatmul.mubr.f32.gmra.mrb[18].mxu0 %v416_v63 }
  0x81   : > { %699 = vmatmul.mubr.f32.gmra.mrb[18].mxu1 %v418_v0  ;;  %558 = vmatprep.mubr.f32.mxu0 %v421_v1 }
  0x82   : > { %703 = vmatprep.mubr.f32.mxu1 %v423_v2 }
  0x84   : > { %559 = vmatmul.mubr.f32.gmra.mrb[20].mxu0 %v420_v5 }
  0x85   : > { %704 = vmatmul.mubr.f32.gmra.mrb[20].mxu1 %v422_v6  ;;  %563 = vmatprep.mubr.f32.mxu0 %v425_v7 }
  0x86   : > { %708 = vmatprep.mubr.f32.mxu1 %v427_v8 }
  0x88   : > { %564 = vmatmul.mubr.f32.gmra.mrb[22].mxu0 %v424_v11 }
  0x89   : > { %709 = vmatmul.mubr.f32.gmra.mrb[22].mxu1 %v426_v12  ;;  %568 = vmatprep.mubr.f32.mxu0 %v429_v13  ;;  %v336_v13 = vld [vmem:[#allocation2 + $0x20] sm:$0xff] }
  0x8a   : > { %713 = vmatprep.mubr.f32.mxu1 %v431_v14 }
  0x8c   : > { %569 = vmatmul.mubr.f32.gmra.mrb[24].mxu0 %v428_v17 }
  0x8d   : > { %714 = vmatmul.mubr.f32.gmra.mrb[24].mxu1 %v430_v33  ;;  %573 = vmatprep.mubr.f32.mxu0 %v433_v18 }
  0x8e   : > { %718 = vmatprep.mubr.f32.mxu1 %v435_v19 }
  0x90   : > { %574 = vmatmul.mubr.f32.gmra.mrb[26].mxu0 %v432_v21 }
  0x91   : > { %719 = vmatmul.mubr.f32.gmra.mrb[26].mxu1 %v434_v22  ;;  %578 = vmatprep.mubr.f32.mxu0 %v437_v23 }
  0x92   : > { %723 = vmatprep.mubr.f32.mxu1 %v439_v24 }
  0x94   : > { %579 = vmatmul.mubr.f32.gmra.mrb[28].mxu0 %v436_v27 }
  0x95   : > { %724 = vmatmul.mubr.f32.gmra.mrb[28].mxu1 %v438_v28  ;;  %583 = vmatprep.mubr.f32.mxu0 %v441_v29  ;;  %v338_v29 = vld [vmem:[#allocation2 + $0x30] sm:$0xff] }
  0x96   : > { %728 = vmatprep.mubr.f32.mxu1 %v443_v30 }
  0x98   : > { %584 = vmatmul.mubr.f32.gmra.mrb[30].mxu0 %v440_v31 }
  0x99   : > { %729 = vmatmul.mubr.f32.gmra.mrb[30].mxu1 %v442_v32 }
 0x12f   : > { %v923_v35 = vpop.f32.mrb[0].mxu0 }
 0x130   : > { %v1003_v36 = vpop.f32.mrb[0].mxu1  ;;  %v924_v37 = vpop.f32.mrb[1].mxu0 }
 0x131   : > { %v925_v38 = vadd.f32 %v924_v37, %v923_v35  ;;  %v1004_v39 = vpop.f32.mrb[1].mxu1 }
 0x132   : > { %v1005_v40 = vadd.f32 %v1004_v39, %v1003_v36 }
 0x133   : > { %v926_v42 = vpop.f32.mrb[2].mxu0 }
 0x134   : > { %v656_v43 = vadd.f32 %v1005_v40, %v925_v38  ;;  %v1006_v44 = vpop.f32.mrb[2].mxu1  ;;  %v927_v45 = vpop.f32.mrb[3].mxu0  ;;  %v339_v40 = vld [vmem:[#allocation2 + $0x38] sm:$0xff] }
 0x135   : > { %v928_v46 = vadd.f32 %v927_v45, %v926_v42  ;;  %v1007_v47 = vpop.f32.mrb[3].mxu1 }
 0x136   : > { %v734_v48 = vadd.f32 %v656_v43, %v332_v41  ;;  %v1008_v49 = vadd.f32 %v1007_v47, %v1006_v44 }
 0x137   : > { %v929_v51 = vpop.f32.mrb[4].mxu0 }
 0x138   : > { %750 = vst [vmem:[#allocation2] sm:$0xff] %v734_v48  ;;  %v661_v52 = vadd.f32 %v1008_v49, %v928_v46  ;;  %v1009_v53 = vpop.f32.mrb[4].mxu1  ;;  %v930_v54 = vpop.f32.mrb[5].mxu0  ;;  %v340_v49 = vld [vmem:[#allocation2 + $0x40] sm:$0xff] }
 0x139   : > { %v931_v55 = vadd.f32 %v930_v54, %v929_v51  ;;  %v1010_v56 = vpop.f32.mrb[5].mxu1 }
 0x13a   : > { %v735_v57 = vadd.f32 %v661_v52, %v333_v50  ;;  %v1011_v58 = vadd.f32 %v1010_v56, %v1009_v53 }
 0x13b   : > { %v932_v60 = vpop.f32.mrb[6].mxu0 }
 0x13c   : > { %751 = vst [vmem:[#allocation2 + $0x8] sm:$0xff] %v735_v57  ;;  %v666_v61 = vadd.f32 %v1011_v58, %v931_v55  ;;  %v1012_v62 = vpop.f32.mrb[6].mxu1  ;;  %v933_v63 = vpop.f32.mrb[7].mxu0  ;;  %v341_v58 = vld [vmem:[#allocation2 + $0x48] sm:$0xff] }
 0x13d   : > { %v934_v0 = vadd.f32 %v933_v63, %v932_v60  ;;  %v1013_v1 = vpop.f32.mrb[7].mxu1 }
 0x13e   : > { %v736_v2 = vadd.f32 %v666_v61, %v334_v59  ;;  %v1014_v3 = vadd.f32 %v1013_v1, %v1012_v62 }
 0x13f   : > { %v935_v5 = vpop.f32.mrb[8].mxu0 }
 0x140   : > { %752 = vst [vmem:[#allocation2 + $0x10] sm:$0xff] %v736_v2  ;;  %v671_v6 = vadd.f32 %v1014_v3, %v934_v0  ;;  %v1015_v7 = vpop.f32.mrb[8].mxu1  ;;  %v936_v8 = vpop.f32.mrb[9].mxu0  ;;  %v342_v3 = vld [vmem:[#allocation2 + $0x50] sm:$0xff] }
 0x141   : > { %v937_v9 = vadd.f32 %v936_v8, %v935_v5  ;;  %v1016_v10 = vpop.f32.mrb[9].mxu1 }
 0x142   : > { %v737_v11 = vadd.f32 %v671_v6, %v335_v4  ;;  %v1017_v12 = vadd.f32 %v1016_v10, %v1015_v7 }
 0x143   : > { %v938_v14 = vpop.f32.mrb[10].mxu0 }
 0x144   : > { %753 = vst [vmem:[#allocation2 + $0x18] sm:$0xff] %v737_v11  ;;  %v676_v15 = vadd.f32 %v1017_v12, %v937_v9  ;;  %v1018_v16 = vpop.f32.mrb[10].mxu1  ;;  %v939_v17 = vpop.f32.mrb[11].mxu0  ;;  %v343_v12 = vld [vmem:[#allocation2 + $0x58] sm:$0xff] }
 0x145   : > { %v940_v33 = vadd.f32 %v939_v17, %v938_v14  ;;  %v1019_v18 = vpop.f32.mrb[11].mxu1 }
 0x146   : > { %v738_v19 = vadd.f32 %v676_v15, %v336_v13  ;;  %v1020_v20 = vadd.f32 %v1019_v18, %v1018_v16 }
 0x147   : > { %v941_v21 = vpop.f32.mrb[12].mxu0 }
 0x148   : > { %754 = vst [vmem:[#allocation2 + $0x20] sm:$0xff] %v738_v19  ;;  %v681_v22 = vadd.f32 %v1020_v20, %v940_v33  ;;  %v1021_v23 = vpop.f32.mrb[12].mxu1  ;;  %v942_v24 = vpop.f32.mrb[13].mxu0  ;;  %v344_v20 = vld [vmem:[#allocation2 + $0x60] sm:$0xff] }
 0x149   : > { %v943_v25 = vadd.f32 %v942_v24, %v941_v21  ;;  %v1022_v26 = vpop.f32.mrb[13].mxu1 }
 0x14a   : > { %v739_v27 = vadd.f32 %v681_v22, %v337_v34  ;;  %v1023_v28 = vadd.f32 %v1022_v26, %v1021_v23 }
 0x14b   : > { %v944_v30 = vpop.f32.mrb[14].mxu0 }
 0x14c   : > { %755 = vst [vmem:[#allocation2 + $0x28] sm:$0xff] %v739_v27  ;;  %v686_v31 = vadd.f32 %v1023_v28, %v943_v25  ;;  %v1024_v32 = vpop.f32.mrb[14].mxu1  ;;  %v945_v35 = vpop.f32.mrb[15].mxu0  ;;  %v345_v28 = vld [vmem:[#allocation2 + $0x68] sm:$0xff] }
 0x14d   : > { %v946_v36 = vadd.f32 %v945_v35, %v944_v30  ;;  %v1025_v37 = vpop.f32.mrb[15].mxu1 }
 0x14e   : > { %v740_v38 = vadd.f32 %v686_v31, %v338_v29  ;;  %v1026_v39 = vadd.f32 %v1025_v37, %v1024_v32 }
 0x14f   : > { %v947_v41 = vpop.f32.mrb[16].mxu0 }
 0x150   : > { %756 = vst [vmem:[#allocation2 + $0x30] sm:$0xff] %v740_v38  ;;  %v691_v42 = vadd.f32 %v1026_v39, %v946_v36  ;;  %v1027_v43 = vpop.f32.mrb[16].mxu1  ;;  %v948_v44 = vpop.f32.mrb[17].mxu0  ;;  %v346_v39 = vld [vmem:[#allocation2 + $0x70] sm:$0xff] }
 0x151   : > { %v949_v45 = vadd.f32 %v948_v44, %v947_v41  ;;  %v1028_v46 = vpop.f32.mrb[17].mxu1 }
 0x152   : > { %v741_v47 = vadd.f32 %v691_v42, %v339_v40  ;;  %v1029_v48 = vadd.f32 %v1028_v46, %v1027_v43 }
 0x153   : > { %v950_v50 = vpop.f32.mrb[18].mxu0 }
 0x154   : > { %757 = vst [vmem:[#allocation2 + $0x38] sm:$0xff] %v741_v47  ;;  %v696_v51 = vadd.f32 %v1029_v48, %v949_v45  ;;  %v1030_v52 = vpop.f32.mrb[18].mxu1  ;;  %v951_v53 = vpop.f32.mrb[19].mxu0  ;;  %v347_v48 = vld [vmem:[#allocation2 + $0x78] sm:$0xff] }
 0x155   : > { %v952_v54 = vadd.f32 %v951_v53, %v950_v50  ;;  %v1031_v55 = vpop.f32.mrb[19].mxu1  ;;  %v772_v53 = vld [vmem:[#allocation2 + $0x10] sm:$0xff] (!%p885_p10) }
 0x156   : > { %v742_v56 = vadd.f32 %v696_v51, %v340_v49  ;;  %v1032_v57 = vadd.f32 %v1031_v55, %v1030_v52  ;;  %v770_v51 = vld [vmem:[#allocation2] sm:$0xff] (!%p885_p10)  ;;  %v771_v52 = vld [vmem:[#allocation2 + $0x8] sm:$0xff] (!%p885_p10)  ;;  %788 = vst [vmem:[%s1505_s2 + $0x10] sm:$0xff] (!%p885_p10), %v772_v53 }
 0x157   : > { %v953_v59 = vpop.f32.mrb[20].mxu0  ;;  %786 = vst [vmem:[%s1505_s2] sm:$0xff] (!%p885_p10), %v770_v51  ;;  %787 = vst [vmem:[%s1505_s2 + $0x8] sm:$0xff] (!%p885_p10), %v771_v52  ;;  %v774_v55 = vld [vmem:[#allocation2 + $0x20] sm:$0xff] (!%p885_p10) }
 0x158   : > { %758 = vst [vmem:[#allocation2 + $0x40] sm:$0xff] %v742_v56  ;;  %v701_v60 = vadd.f32 %v1032_v57, %v952_v54  ;;  %v1033_v61 = vpop.f32.mrb[20].mxu1  ;;  %v954_v62 = vpop.f32.mrb[21].mxu0  ;;  %v773_v54 = vld [vmem:[#allocation2 + $0x18] sm:$0xff] (!%p885_p10)  ;;  %v775_v56 = vld [vmem:[#allocation2 + $0x28] sm:$0xff] (!%p885_p10)  ;;  %790 = vst [vmem:[%s1505_s2 + $0x20] sm:$0xff] (!%p885_p10), %v774_v55 }
 0x159   : > { %v955_v63 = vadd.f32 %v954_v62, %v953_v59  ;;  %v1034_v0 = vpop.f32.mrb[21].mxu1  ;;  %789 = vst [vmem:[%s1505_s2 + $0x18] sm:$0xff] (!%p885_p10), %v773_v54  ;;  %791 = vst [vmem:[%s1505_s2 + $0x28] sm:$0xff] (!%p885_p10), %v775_v56  ;;  %v776_v57 = vld [vmem:[#allocation2 + $0x30] sm:$0xff] (!%p885_p10) }
 0x15a   : > { %v743_v1 = vadd.f32 %v701_v60, %v341_v58  ;;  %v1035_v2 = vadd.f32 %v1034_v0, %v1033_v61  ;;  %792 = vst [vmem:[%s1505_s2 + $0x30] sm:$0xff] (!%p885_p10), %v776_v57 }
 0x15b   : > { %v956_v4 = vpop.f32.mrb[22].mxu0  ;;  %v777_v58 = vld [vmem:[#allocation2 + $0x38] sm:$0xff] (!%p885_p10) }
 0x15c   : > { %759 = vst [vmem:[#allocation2 + $0x48] sm:$0xff] %v743_v1  ;;  %v706_v5 = vadd.f32 %v1035_v2, %v955_v63  ;;  %v1036_v6 = vpop.f32.mrb[22].mxu1  ;;  %v957_v7 = vpop.f32.mrb[23].mxu0  ;;  %793 = vst [vmem:[%s1505_s2 + $0x38] sm:$0xff] (!%p885_p10), %v777_v58 }
 0x15d   : > { %v958_v8 = vadd.f32 %v957_v7, %v956_v4  ;;  %v1037_v9 = vpop.f32.mrb[23].mxu1 }
 0x15e   : > { %v744_v10 = vadd.f32 %v706_v5, %v342_v3  ;;  %v1038_v11 = vadd.f32 %v1037_v9, %v1036_v6 }
 0x15f   : > { %v959_v13 = vpop.f32.mrb[24].mxu0  ;;  %v778_v59 = vld [vmem:[#allocation2 + $0x40] sm:$0xff] (!%p885_p10) }
 0x160   : > { %760 = vst [vmem:[#allocation2 + $0x50] sm:$0xff] %v744_v10  ;;  %v711_v14 = vadd.f32 %v1038_v11, %v958_v8  ;;  %v1039_v15 = vpop.f32.mrb[24].mxu1  ;;  %v960_v16 = vpop.f32.mrb[25].mxu0  ;;  %794 = vst [vmem:[%s1505_s2 + $0x40] sm:$0xff] (!%p885_p10), %v778_v59 }
 0x161   : > { %v961_v17 = vadd.f32 %v960_v16, %v959_v13  ;;  %v1040_v33 = vpop.f32.mrb[25].mxu1 }
 0x162   : > { %v745_v18 = vadd.f32 %v711_v14, %v343_v12  ;;  %v1041_v19 = vadd.f32 %v1040_v33, %v1039_v15 }
 0x163   : > { %v962_v34 = vpop.f32.mrb[26].mxu0  ;;  %v779_v60 = vld [vmem:[#allocation2 + $0x48] sm:$0xff] (!%p885_p10) }
 0x164   : > { %761 = vst [vmem:[#allocation2 + $0x58] sm:$0xff] %v745_v18  ;;  %v716_v21 = vadd.f32 %v1041_v19, %v961_v17  ;;  %v1042_v22 = vpop.f32.mrb[26].mxu1  ;;  %v963_v23 = vpop.f32.mrb[27].mxu0  ;;  %795 = vst [vmem:[%s1505_s2 + $0x48] sm:$0xff] (!%p885_p10), %v779_v60 }
 0x165   : > { %v964_v24 = vadd.f32 %v963_v23, %v962_v34  ;;  %v1043_v25 = vpop.f32.mrb[27].mxu1 }
 0x166   : > { %v746_v26 = vadd.f32 %v716_v21, %v344_v20  ;;  %v1044_v27 = vadd.f32 %v1043_v25, %v1042_v22 }
 0x167   : > { %v965_v29 = vpop.f32.mrb[28].mxu0  ;;  %v780_v61 = vld [vmem:[#allocation2 + $0x50] sm:$0xff] (!%p885_p10) }
 0x168   : > { %762 = vst [vmem:[#allocation2 + $0x60] sm:$0xff] %v746_v26  ;;  %v721_v30 = vadd.f32 %v1044_v27, %v964_v24  ;;  %v1045_v31 = vpop.f32.mrb[28].mxu1  ;;  %v966_v32 = vpop.f32.mrb[29].mxu0  ;;  %796 = vst [vmem:[%s1505_s2 + $0x50] sm:$0xff] (!%p885_p10), %v780_v61 }
 0x169   : > { %v967_v35 = vadd.f32 %v966_v32, %v965_v29  ;;  %v1046_v36 = vpop.f32.mrb[29].mxu1 }
 0x16a   : > { %v747_v37 = vadd.f32 %v721_v30, %v345_v28  ;;  %v1047_v38 = vadd.f32 %v1046_v36, %v1045_v31 }
 0x16b   : > { %v968_v40 = vpop.f32.mrb[30].mxu0  ;;  %v781_v62 = vld [vmem:[#allocation2 + $0x58] sm:$0xff] (!%p885_p10) }
 0x16c   : > { %763 = vst [vmem:[#allocation2 + $0x68] sm:$0xff] %v747_v37  ;;  %v726_v41 = vadd.f32 %v1047_v38, %v967_v35  ;;  %v1048_v42 = vpop.f32.mrb[30].mxu1  ;;  %v969_v43 = vpop.f32.mrb[31].mxu0  ;;  %797 = vst [vmem:[%s1505_s2 + $0x58] sm:$0xff] (!%p885_p10), %v781_v62 }
 0x16d   : > { %v970_v44 = vadd.f32 %v969_v43, %v968_v40  ;;  %v1049_v45 = vpop.f32.mrb[31].mxu1 }
 0x16e   : > { %v748_v46 = vadd.f32 %v726_v41, %v346_v39  ;;  %v1050_v47 = vadd.f32 %v1049_v45, %v1048_v42  ;;  %769 = sbr.rel (%p885_p10) target bundleno = 381 (0x17d), region = 59 }
 0x16f   : > { %v782_v63 = vld [vmem:[#allocation2 + $0x60] sm:$0xff] (!%p885_p10) }
 0x170   : > { %764 = vst [vmem:[#allocation2 + $0x70] sm:$0xff] %v748_v46  ;;  %v731_v49 = vadd.f32 %v1050_v47, %v970_v44  ;;  %798 = vst [vmem:[%s1505_s2 + $0x60] sm:$0xff] (!%p885_p10), %v782_v63 }
 0x172   : > { %v749_v50 = vadd.f32 %v731_v49, %v347_v48 }
 0x173   : > { %v783_v0 = vld [vmem:[#allocation2 + $0x68] sm:$0xff] (!%p885_p10) }
 0x174   : > { %765 = vst [vmem:[#allocation2 + $0x78] sm:$0xff] %v749_v50  ;;  %799 = vst [vmem:[%s1505_s2 + $0x68] sm:$0xff] (!%p885_p10), %v783_v0 }
 0x177   : > { %v784_v1 = vld [vmem:[#allocation2 + $0x70] sm:$0xff] }
 0x178   : > { %800 = vst [vmem:[%s1505_s2 + $0x70] sm:$0xff] %v784_v1 }
 0x17b   : > { %v785_v2 = vld [vmem:[#allocation2 + $0x78] sm:$0xff] }
 0x17c   : > { %801 = vst [vmem:[%s1505_s2 + $0x78] sm:$0xff] %v785_v2 }
 0x17d PF: > { %s12_s13 = sadd.s32 1, %s1194_s13   ;;  %s1506_s9 = smov %s1182_s10 }
 0x17e   : > { %p9_p11 = scmp.ge.s32.totalorder %s12_s13, 10   ;;  %s1507_s10 = smov %s1247_s17 }
 0x17f   : > { %s1508_s11 = smov %s1190_s12  ;;  %s1509_s12 = smov %s1511_s14 }
 0x180   :  { %11 = sbr.rel (!%p9_p11) target bundleno = 3 (0x3), region = 95 }

// kernel: gcn_forward.5
= control target key start
LH: loop header
LB: loop body
LE: loop exit
PB: predicated region body
PF: predicated region fallthrough
CT: control target
= control target key end

     0   :  { %s522_s1 = inlined_call_operand.vmem [shape: f32[128,128], index: 1, kind: input, shape index: {}]   ;;  %s523_s0 = inlined_call_operand.vmem [shape: f32[128,128], index: 0, kind: input, shape index: {}]   ;;  %s524_s2 = inlined_call_operand.vmem [shape: f32[1,128], index: 2, kind: input, shape index: {}]   ;;  %s525_s3 = inlined_call_operand.vmem [shape: f32[128,128], index: 3, kind: output, shape index: {}]  }
   0x1   :  { %v30_v0 = vld [vmem:[%s522_s1] sm:$0xff]  ;;  %v31_v1 = vld [vmem:[%s522_s1 + $0x8] sm:$0xff]  ;;  %v32_v2 = vld [vmem:[%s522_s1 + $0x10] sm:$0xff] }
   0x2   :  { %v307_v3 = vpack.c.bf16 %v31_v1, %v30_v0  ;;  %v33_v4 = vld [vmem:[%s522_s1 + $0x18] sm:$0xff]  ;;  %v34_v6 = vld [vmem:[%s522_s1 + $0x20] sm:$0xff]  ;;  %v35_v7 = vld [vmem:[%s522_s1 + $0x28] sm:$0xff] }
   0x3   :  { %v311_v5 = vpack.c.bf16 %v33_v4, %v32_v2  ;;  %v315_v8 = vpack.c.bf16 %v35_v7, %v34_v6  ;;  %v14_v9 = vld [vmem:[%s523_s0] sm:$0xff]  ;;  %v36_v11 = vld [vmem:[%s522_s1 + $0x30] sm:$0xff]  ;;  %v37_v12 = vld [vmem:[%s522_s1 + $0x38] sm:$0xff] }
   0x4   :  { %308 = vmatprep.subr.bf16.mxu0 %v307_v3  ;;  %339 = vmatprep.subr.bf16.mxu1 %v307_v3  ;;  %v22_v10 = vld [vmem:[%s523_s0 + $0x40] sm:$0xff]  ;;  %v319_v13 = vpack.c.bf16 %v37_v12, %v36_v11  ;;  %v39_v15 = vld [vmem:[%s522_s1 + $0x48] sm:$0xff]  ;;  %v40_v17 = vld [vmem:[%s522_s1 + $0x50] sm:$0xff] }
   0x5   :  { %310 = vmatpush3.bf16.msra.mxu0 %v307_v3  ;;  %347 = vmatpush3.bf16.msra.mxu1 %v307_v3  ;;  %v38_v14 = vld [vmem:[%s522_s1 + $0x40] sm:$0xff]  ;;  %v41_v18 = vld [vmem:[%s522_s1 + $0x58] sm:$0xff]  ;;  %v43_v21 = vld [vmem:[%s522_s1 + $0x68] sm:$0xff] }
   0x6   :  { %312 = vmatprep.subr.bf16.mxu0 %v311_v5  ;;  %340 = vmatprep.subr.bf16.mxu1 %v311_v5  ;;  %v323_v16 = vpack.c.bf16 %v39_v15, %v38_v14  ;;  %v327_v19 = vpack.c.bf16 %v41_v18, %v40_v17  ;;  %v42_v20 = vld [vmem:[%s522_s1 + $0x60] sm:$0xff]  ;;  %v44_v23 = vld [vmem:[%s522_s1 + $0x70] sm:$0xff]  ;;  %v45_v24 = vld [vmem:[%s522_s1 + $0x78] sm:$0xff] }
   0x7   :  { %283 = vmatprep.mubr.f32.mxu0 %v14_v9  ;;  %295 = vmatprep.mubr.f32.mxu1 %v22_v10  ;;  %v331_v22 = vpack.c.bf16 %v43_v21, %v42_v20  ;;  %v335_v25 = vpack.c.bf16 %v45_v24, %v44_v23  ;;  %v15_v26 = vld [vmem:[%s523_s0 + $0x8] sm:$0xff]  ;;  %v16_v28 = vld [vmem:[%s523_s0 + $0x10] sm:$0xff]  ;;  %v17_v30 = vld [vmem:[%s523_s0 + $0x18] sm:$0xff] }
   0x8   :  { %v23_v27 = vld [vmem:[%s523_s0 + $0x48] sm:$0xff]  ;;  %v24_v29 = vld [vmem:[%s523_s0 + $0x50] sm:$0xff]  ;;  %v25_v31 = vld [vmem:[%s523_s0 + $0x58] sm:$0xff] }
   0x9   :  { %314 = vmatpush3.bf16.msra.mxu0 %v311_v5  ;;  %348 = vmatpush3.bf16.msra.mxu1 %v311_v5  ;;  %v18_v32 = vld [vmem:[%s523_s0 + $0x20] sm:$0xff]  ;;  %v19_v34 = vld [vmem:[%s523_s0 + $0x28] sm:$0xff]  ;;  %v20_v36 = vld [vmem:[%s523_s0 + $0x30] sm:$0xff] }
   0xa   :  { %316 = vmatprep.subr.bf16.mxu0 %v315_v8  ;;  %341 = vmatprep.subr.bf16.mxu1 %v315_v8  ;;  %v26_v33 = vld [vmem:[%s523_s0 + $0x60] sm:$0xff]  ;;  %v27_v35 = vld [vmem:[%s523_s0 + $0x68] sm:$0xff]  ;;  %v28_v37 = vld [vmem:[%s523_s0 + $0x70] sm:$0xff] }
   0xb   :  { %v21_v38 = vld [vmem:[%s523_s0 + $0x38] sm:$0xff]  ;;  %v218_v40 = vld [vmem:[%s524_s2] ss:$0 sm:$0xff] }
   0xc   :  { %v29_v39 = vld [vmem:[%s523_s0 + $0x78] sm:$0xff] }
   0xd   :  { %318 = vmatpush3.bf16.msra.mxu0 %v315_v8  ;;  %349 = vmatpush3.bf16.msra.mxu1 %v315_v8 }
   0xe   :  { %320 = vmatprep.subr.bf16.mxu0 %v319_v13  ;;  %342 = vmatprep.subr.bf16.mxu1 %v319_v13 }
  0x11   :  { %322 = vmatpush3.bf16.msra.mxu0 %v319_v13  ;;  %350 = vmatpush3.bf16.msra.mxu1 %v319_v13 }
  0x12   :  { %324 = vmatprep.subr.bf16.mxu0 %v323_v16  ;;  %343 = vmatprep.subr.bf16.mxu1 %v323_v16 }
  0x15   :  { %326 = vmatpush3.bf16.msra.mxu0 %v323_v16  ;;  %351 = vmatpush3.bf16.msra.mxu1 %v323_v16 }
  0x16   :  { %328 = vmatprep.subr.bf16.mxu0 %v327_v19  ;;  %344 = vmatprep.subr.bf16.mxu1 %v327_v19 }
  0x19   :  { %330 = vmatpush3.bf16.msra.mxu0 %v327_v19  ;;  %352 = vmatpush3.bf16.msra.mxu1 %v327_v19 }
  0x1a   :  { %332 = vmatprep.subr.bf16.mxu0 %v331_v22  ;;  %345 = vmatprep.subr.bf16.mxu1 %v331_v22 }
  0x1d   :  { %334 = vmatpush3.bf16.msra.mxu0 %v331_v22  ;;  %353 = vmatpush3.bf16.msra.mxu1 %v331_v22 }
  0x1e   :  { %336 = vmatprep.subr.bf16.mxu0 %v335_v25  ;;  %346 = vmatprep.subr.bf16.mxu1 %v335_v25 }
  0x21   :  { %338 = vmatpush3.bf16.msra.mxu0 %v335_v25  ;;  %354 = vmatpush3.bf16.msra.mxu1 %v335_v25 }
  0x24   :  { %284 = vmatmul.mubr.f32.vlgmr.msra.gmra.mrb[0].mxu0 %v15_v26  ;;  %296 = vmatmul.mubr.f32.vlgmr.msra.gmra.mrb[0].mxu1 %v23_v27 }
  0x25   :  { %286 = vmatprep.mubr.f32.mxu0 %v16_v28  ;;  %298 = vmatprep.mubr.f32.mxu1 %v24_v29 }
  0x28   :  { %287 = vmatmul.mubr.f32.gmra.mrb[2].mxu0 %v17_v30  ;;  %299 = vmatmul.mubr.f32.gmra.mrb[2].mxu1 %v25_v31 }
  0x29   :  { %289 = vmatprep.mubr.f32.mxu0 %v18_v32  ;;  %301 = vmatprep.mubr.f32.mxu1 %v26_v33 }
  0x2c   :  { %290 = vmatmul.mubr.f32.gmra.mrb[4].mxu0 %v19_v34  ;;  %302 = vmatmul.mubr.f32.gmra.mrb[4].mxu1 %v27_v35 }
  0x2d   :  { %292 = vmatprep.mubr.f32.mxu0 %v20_v36  ;;  %304 = vmatprep.mubr.f32.mxu1 %v28_v37 }
  0x30   :  { %293 = vmatmul.mubr.f32.gmra.mrb[6].mxu0 %v21_v38  ;;  %305 = vmatmul.mubr.f32.gmra.mrb[6].mxu1 %v29_v39 }
  0xf7   :  { %v285_v41 = vpop.f32.mrb[0].mxu0  ;;  %v297_v42 = vpop.f32.mrb[0].mxu1 }
  0xf8   :  { %v125_v43 = vadd.f32 %v285_v41, %v218_v40  ;;  %v165_v44 = vadd.f32 %v297_v42, %v218_v40  ;;  %v119_v45 = vpop.f32.mrb[1].mxu0  ;;  %v159_v46 = vpop.f32.mrb[1].mxu1 }
  0xf9   :  { %v120_v47 = vadd.f32 %v218_v40, %v119_v45  ;;  %v160_v48 = vadd.f32 %v218_v40, %v159_v46 }
  0xfa   :  { %199 = vst [vmem:[%s525_s3 + $0x8] sm:$0xff] %v125_v43  ;;  %207 = vst [vmem:[%s525_s3 + $0x48] sm:$0xff] %v165_v44 }
  0xfb   :  { %198 = vst [vmem:[%s525_s3] sm:$0xff] %v120_v47  ;;  %206 = vst [vmem:[%s525_s3 + $0x40] sm:$0xff] %v160_v48  ;;  %v288_v49 = vpop.f32.mrb[2].mxu0  ;;  %v300_v50 = vpop.f32.mrb[2].mxu1 }
  0xfc   :  { %v135_v51 = vadd.f32 %v288_v49, %v218_v40  ;;  %v175_v52 = vadd.f32 %v300_v50, %v218_v40  ;;  %v129_v53 = vpop.f32.mrb[3].mxu0  ;;  %v169_v54 = vpop.f32.mrb[3].mxu1 }
  0xfd   :  { %v130_v55 = vadd.f32 %v218_v40, %v129_v53  ;;  %v170_v56 = vadd.f32 %v218_v40, %v169_v54 }
  0xfe   :  { %201 = vst [vmem:[%s525_s3 + $0x18] sm:$0xff] %v135_v51  ;;  %209 = vst [vmem:[%s525_s3 + $0x58] sm:$0xff] %v175_v52 }
  0xff   :  { %200 = vst [vmem:[%s525_s3 + $0x10] sm:$0xff] %v130_v55  ;;  %208 = vst [vmem:[%s525_s3 + $0x50] sm:$0xff] %v170_v56  ;;  %v291_v57 = vpop.f32.mrb[4].mxu0  ;;  %v303_v58 = vpop.f32.mrb[4].mxu1 }
 0x100   :  { %v145_v59 = vadd.f32 %v291_v57, %v218_v40  ;;  %v185_v60 = vadd.f32 %v303_v58, %v218_v40  ;;  %v139_v61 = vpop.f32.mrb[5].mxu0  ;;  %v179_v62 = vpop.f32.mrb[5].mxu1 }
 0x101   :  { %v140_v63 = vadd.f32 %v218_v40, %v139_v61  ;;  %v180_v0 = vadd.f32 %v218_v40, %v179_v62 }
 0x102   :  { %203 = vst [vmem:[%s525_s3 + $0x28] sm:$0xff] %v145_v59  ;;  %211 = vst [vmem:[%s525_s3 + $0x68] sm:$0xff] %v185_v60 }
 0x103   :  { %202 = vst [vmem:[%s525_s3 + $0x20] sm:$0xff] %v140_v63  ;;  %210 = vst [vmem:[%s525_s3 + $0x60] sm:$0xff] %v180_v0  ;;  %v294_v1 = vpop.f32.mrb[6].mxu0  ;;  %v306_v2 = vpop.f32.mrb[6].mxu1 }
 0x104   :  { %v155_v3 = vadd.f32 %v294_v1, %v218_v40  ;;  %v195_v4 = vadd.f32 %v306_v2, %v218_v40  ;;  %v149_v5 = vpop.f32.mrb[7].mxu0  ;;  %v189_v6 = vpop.f32.mrb[7].mxu1 }
 0x105   :  { %v150_v7 = vadd.f32 %v218_v40, %v149_v5  ;;  %v190_v8 = vadd.f32 %v218_v40, %v189_v6 }
 0x106   :  { %205 = vst [vmem:[%s525_s3 + $0x38] sm:$0xff] %v155_v3  ;;  %213 = vst [vmem:[%s525_s3 + $0x78] sm:$0xff] %v195_v4 }
 0x107   :  { %204 = vst [vmem:[%s525_s3 + $0x30] sm:$0xff] %v150_v7  ;;  %212 = vst [vmem:[%s525_s3 + $0x70] sm:$0xff] %v190_v8 }

// kernel: gcn_forward.4
= control target key start
LH: loop header
LB: loop body
LE: loop exit
PB: predicated region body
PF: predicated region fallthrough
CT: control target
= control target key end

     0   :  { %s859_s1 = inlined_call_operand.vmem [shape: f32[128,128], index: 1, kind: input, shape index: {}]   ;;  %s860_s0 = inlined_call_operand.vmem [shape: f32[128,128], index: 0, kind: input, shape index: {}]   ;;  %s861_s3 = inlined_call_operand.vmem [shape: f32[128,128], index: 3, kind: input, shape index: {}]   ;;  %s862_s2 = inlined_call_operand.vmem [shape: f32[1,128], index: 2, kind: input, shape index: {}]   ;;  %s863_s4 = inlined_call_operand.vmem [shape: f32[128,128], index: 4, kind: output, shape index: {}]  }
   0x1   :  { %v33_v0 = vld [vmem:[%s859_s1] sm:$0xff]  ;;  %v34_v1 = vld [vmem:[%s859_s1 + $0x8] sm:$0xff]  ;;  %v35_v2 = vld [vmem:[%s859_s1 + $0x10] sm:$0xff] }
   0x2   :  { %v575_v3 = vpack.c.bf16 %v34_v1, %v33_v0  ;;  %v36_v4 = vld [vmem:[%s859_s1 + $0x18] sm:$0xff]  ;;  %v37_v6 = vld [vmem:[%s859_s1 + $0x20] sm:$0xff]  ;;  %v38_v7 = vld [vmem:[%s859_s1 + $0x28] sm:$0xff] }
   0x3   :  { %v579_v5 = vpack.c.bf16 %v36_v4, %v35_v2  ;;  %v583_v8 = vpack.c.bf16 %v38_v7, %v37_v6  ;;  %v17_v9 = vld [vmem:[%s860_s0] sm:$0xff]  ;;  %v39_v10 = vld [vmem:[%s859_s1 + $0x30] sm:$0xff]  ;;  %v40_v11 = vld [vmem:[%s859_s1 + $0x38] sm:$0xff] }
   0x4   :  { %576 = vmatprep.subr.bf16.mxu0 %v575_v3  ;;  %495 = vmatprep.mubr.f32.mxu0 %v17_v9  ;;  %v587_v12 = vpack.c.bf16 %v40_v11, %v39_v10  ;;  %v41_v13 = vld [vmem:[%s859_s1 + $0x40] sm:$0xff]  ;;  %v42_v14 = vld [vmem:[%s859_s1 + $0x48] sm:$0xff]  ;;  %v219_v17 = vld [vmem:[%s861_s3 + $0x10] sm:$0xff] }
   0x5   :  { %578 = vmatpush3.bf16.msra.mxu0 %v575_v3  ;;  %v217_v15 = vld [vmem:[%s861_s3] sm:$0xff]  ;;  %v218_v16 = vld [vmem:[%s861_s3 + $0x8] sm:$0xff]  ;;  %v220_v18 = vld [vmem:[%s861_s3 + $0x18] sm:$0xff]  ;;  %v591_v21 = vpack.c.bf16 %v42_v14, %v41_v13 }
   0x6   :  { %580 = vmatprep.subr.bf16.mxu0 %v579_v5  ;;  %v607_v19 = vpack.c.bf16 %v218_v16, %v217_v15  ;;  %v611_v20 = vpack.c.bf16 %v220_v18, %v219_v17  ;;  %v221_v22 = vld [vmem:[%s861_s3 + $0x20] sm:$0xff]  ;;  %v222_v23 = vld [vmem:[%s861_s3 + $0x28] sm:$0xff]  ;;  %v43_v24 = vld [vmem:[%s859_s1 + $0x50] sm:$0xff] }
   0x7   :  { %v44_v25 = vld [vmem:[%s859_s1 + $0x58] sm:$0xff]  ;;  %v615_v26 = vpack.c.bf16 %v222_v23, %v221_v22  ;;  %v223_v28 = vld [vmem:[%s861_s3 + $0x30] sm:$0xff]  ;;  %v45_v30 = vld [vmem:[%s859_s1 + $0x60] sm:$0xff] }
   0x8   :  { %608 = vmatprep.subr.bf16.mxu1 %v607_v19  ;;  %v595_v27 = vpack.c.bf16 %v44_v25, %v43_v24  ;;  %v224_v29 = vld [vmem:[%s861_s3 + $0x38] sm:$0xff]  ;;  %v46_v31 = vld [vmem:[%s859_s1 + $0x68] sm:$0xff]  ;;  %v225_v34 = vld [vmem:[%s861_s3 + $0x40] sm:$0xff] }
   0x9   :  { %582 = vmatpush3.bf16.msra.mxu0 %v579_v5  ;;  %610 = vmatpush3.bf16.msra.mxu1 %v607_v19  ;;  %v619_v32 = vpack.c.bf16 %v224_v29, %v223_v28  ;;  %v599_v33 = vpack.c.bf16 %v46_v31, %v45_v30  ;;  %v226_v35 = vld [vmem:[%s861_s3 + $0x48] sm:$0xff]  ;;  %v47_v36 = vld [vmem:[%s859_s1 + $0x70] sm:$0xff]  ;;  %v48_v37 = vld [vmem:[%s859_s1 + $0x78] sm:$0xff] }
   0xa   :  { %584 = vmatprep.subr.bf16.mxu0 %v583_v8  ;;  %612 = vmatprep.subr.bf16.mxu1 %v611_v20  ;;  %v623_v38 = vpack.c.bf16 %v226_v35, %v225_v34  ;;  %v603_v39 = vpack.c.bf16 %v48_v37, %v47_v36  ;;  %v227_v40 = vld [vmem:[%s861_s3 + $0x50] sm:$0xff]  ;;  %v228_v41 = vld [vmem:[%s861_s3 + $0x58] sm:$0xff]  ;;  %v229_v43 = vld [vmem:[%s861_s3 + $0x60] sm:$0xff] }
   0xb   :  { %v627_v42 = vpack.c.bf16 %v228_v41, %v227_v40  ;;  %v230_v44 = vld [vmem:[%s861_s3 + $0x68] sm:$0xff]  ;;  %v19_v47 = vld [vmem:[%s860_s0 + $0x10] sm:$0xff]  ;;  %v20_v48 = vld [vmem:[%s860_s0 + $0x18] sm:$0xff] }
   0xc   :  { %v18_v45 = vld [vmem:[%s860_s0 + $0x8] sm:$0xff]  ;;  %v631_v46 = vpack.c.bf16 %v230_v44, %v229_v43  ;;  %v21_v49 = vld [vmem:[%s860_s0 + $0x20] sm:$0xff]  ;;  %v23_v51 = vld [vmem:[%s860_s0 + $0x30] sm:$0xff] }
   0xd   :  { %586 = vmatpush3.bf16.msra.mxu0 %v583_v8  ;;  %614 = vmatpush3.bf16.msra.mxu1 %v611_v20  ;;  %v22_v50 = vld [vmem:[%s860_s0 + $0x28] sm:$0xff]  ;;  %v24_v52 = vld [vmem:[%s860_s0 + $0x38] sm:$0xff]  ;;  %v25_v53 = vld [vmem:[%s860_s0 + $0x40] sm:$0xff] }
   0xe   :  { %588 = vmatprep.subr.bf16.mxu0 %v587_v12  ;;  %616 = vmatprep.subr.bf16.mxu1 %v615_v26  ;;  %v26_v54 = vld [vmem:[%s860_s0 + $0x48] sm:$0xff]  ;;  %v27_v55 = vld [vmem:[%s860_s0 + $0x50] sm:$0xff]  ;;  %v28_v56 = vld [vmem:[%s860_s0 + $0x58] sm:$0xff] }
   0xf   :  { %v29_v57 = vld [vmem:[%s860_s0 + $0x60] sm:$0xff]  ;;  %v30_v58 = vld [vmem:[%s860_s0 + $0x68] sm:$0xff]  ;;  %v31_v59 = vld [vmem:[%s860_s0 + $0x70] sm:$0xff] }
  0x10   :  { %v32_v60 = vld [vmem:[%s860_s0 + $0x78] sm:$0xff]  ;;  %v231_v61 = vld [vmem:[%s861_s3 + $0x70] sm:$0xff]  ;;  %v398_v0 = vld [vmem:[%s862_s2] ss:$0 sm:$0xff] }
  0x11   :  { %590 = vmatpush3.bf16.msra.mxu0 %v587_v12  ;;  %618 = vmatpush3.bf16.msra.mxu1 %v615_v26  ;;  %v232_v62 = vld [vmem:[%s861_s3 + $0x78] sm:$0xff] }
  0x12   :  { %592 = vmatprep.subr.bf16.mxu0 %v591_v21  ;;  %620 = vmatprep.subr.bf16.mxu1 %v619_v32  ;;  %v635_v63 = vpack.c.bf16 %v232_v62, %v231_v61 }
  0x15   :  { %594 = vmatpush3.bf16.msra.mxu0 %v591_v21  ;;  %622 = vmatpush3.bf16.msra.mxu1 %v619_v32 }
  0x16   :  { %596 = vmatprep.subr.bf16.mxu0 %v595_v27  ;;  %624 = vmatprep.subr.bf16.mxu1 %v623_v38 }
  0x19   :  { %598 = vmatpush3.bf16.msra.mxu0 %v595_v27  ;;  %626 = vmatpush3.bf16.msra.mxu1 %v623_v38 }
  0x1a   :  { %600 = vmatprep.subr.bf16.mxu0 %v599_v33  ;;  %628 = vmatprep.subr.bf16.mxu1 %v627_v42 }
  0x1d   :  { %602 = vmatpush3.bf16.msra.mxu0 %v599_v33  ;;  %630 = vmatpush3.bf16.msra.mxu1 %v627_v42 }
  0x1e   :  { %604 = vmatprep.subr.bf16.mxu0 %v603_v39  ;;  %632 = vmatprep.subr.bf16.mxu1 %v631_v46 }
  0x21   :  { %606 = vmatpush3.bf16.msra.mxu0 %v603_v39  ;;  %634 = vmatpush3.bf16.msra.mxu1 %v631_v46 }
  0x22   :  { %636 = vmatprep.subr.bf16.mxu1 %v635_v63 }
  0x24   :  { %496 = vmatmul.mubr.f32.vlgmr.msra.gmra.mrb[0].mxu0 %v18_v45 }
  0x25   :  { %498 = vmatprep.mubr.f32.mxu0 %v19_v47  ;;  %638 = vmatpush3.bf16.msra.mxu1 %v635_v63 }
  0x28   :  { %499 = vmatmul.mubr.f32.gmra.mrb[2].mxu0 %v20_v48 }
  0x29   :  { %501 = vmatprep.mubr.f32.mxu0 %v21_v49 }
  0x2c   :  { %502 = vmatmul.mubr.f32.gmra.mrb[4].mxu0 %v22_v50 }
  0x2d   :  { %504 = vmatprep.mubr.f32.mxu0 %v23_v51 }
  0x30   :  { %505 = vmatmul.mubr.f32.gmra.mrb[6].mxu0 %v24_v52 }
  0x31   :  { %507 = vmatprep.mubr.f32.mxu0 %v25_v53 }
  0x34   :  { %508 = vmatmul.mubr.f32.gmra.mrb[8].mxu0 %v26_v54 }
  0x35   :  { %510 = vmatprep.mubr.f32.mxu0 %v27_v55 }
  0x38   :  { %511 = vmatmul.mubr.f32.gmra.mrb[10].mxu0 %v28_v56 }
  0x39   :  { %513 = vmatprep.mubr.f32.mxu0 %v29_v57 }
  0x3c   :  { %514 = vmatmul.mubr.f32.gmra.mrb[12].mxu0 %v30_v58 }
  0x3d   :  { %516 = vmatprep.mubr.f32.mxu0 %v31_v59 }
  0x40   :  { %517 = vmatmul.mubr.f32.gmra.mrb[14].mxu0 %v32_v60 }
  0xf7   :  { %v497_v1 = vpop.f32.mrb[0].mxu0 }
  0xf8   :  { %v128_v2 = vadd.f32 %v497_v1, %v398_v0  ;;  %v122_v3 = vpop.f32.mrb[1].mxu0 }
  0xf9   :  { %v123_v4 = vadd.f32 %v398_v0, %v122_v3 }
  0xfa   :  { %v202_v7 = vmax.f32 %v128_v2, 0.0 }
  0xfb   :  { %v500_v5 = vpop.f32.mrb[2].mxu0  ;;  %v201_v6 = vmax.f32 %v123_v4, 0.0 }
  0xfc   :  { %v138_v8 = vadd.f32 %v500_v5, %v398_v0  ;;  %v132_v9 = vpop.f32.mrb[3].mxu0 }
  0xfd   :  { %v133_v10 = vadd.f32 %v398_v0, %v132_v9  ;;  %551 = vmatprep.mubr.f32.mxu1 %v201_v6 }
  0xfe   :  { %552 = vmatmul.mubr.f32.vlgmr.msra.gmra.mrb[0].mxu1 %v202_v7  ;;  %v204_v13 = vmax.f32 %v138_v8, 0.0 }
  0xff   :  { %v203_v11 = vmax.f32 %v133_v10, 0.0  ;;  %v503_v12 = vpop.f32.mrb[4].mxu0 }
 0x100   :  { %v148_v14 = vadd.f32 %v503_v12, %v398_v0  ;;  %v142_v15 = vpop.f32.mrb[5].mxu0 }
 0x101   :  { %v143_v16 = vadd.f32 %v398_v0, %v142_v15  ;;  %554 = vmatprep.mubr.f32.mxu1 %v203_v11 }
 0x102   :  { %555 = vmatmul.mubr.f32.gmra.mrb[2].mxu1 %v204_v13  ;;  %v206_v19 = vmax.f32 %v148_v14, 0.0 }
 0x103   :  { %v205_v17 = vmax.f32 %v143_v16, 0.0  ;;  %v506_v18 = vpop.f32.mrb[6].mxu0 }
 0x104   :  { %v158_v20 = vadd.f32 %v506_v18, %v398_v0  ;;  %v152_v21 = vpop.f32.mrb[7].mxu0 }
 0x105   :  { %v153_v22 = vadd.f32 %v398_v0, %v152_v21  ;;  %557 = vmatprep.mubr.f32.mxu1 %v205_v17 }
 0x106   :  { %558 = vmatmul.mubr.f32.gmra.mrb[4].mxu1 %v206_v19  ;;  %v208_v25 = vmax.f32 %v158_v20, 0.0 }
 0x107   :  { %v207_v23 = vmax.f32 %v153_v22, 0.0  ;;  %v509_v24 = vpop.f32.mrb[8].mxu0 }
 0x108   :  { %v168_v26 = vadd.f32 %v509_v24, %v398_v0  ;;  %v162_v27 = vpop.f32.mrb[9].mxu0 }
 0x109   :  { %v163_v28 = vadd.f32 %v398_v0, %v162_v27  ;;  %560 = vmatprep.mubr.f32.mxu1 %v207_v23 }
 0x10a   :  { %561 = vmatmul.mubr.f32.gmra.mrb[6].mxu1 %v208_v25  ;;  %v210_v31 = vmax.f32 %v168_v26, 0.0 }
 0x10b   :  { %v209_v29 = vmax.f32 %v163_v28, 0.0  ;;  %v512_v30 = vpop.f32.mrb[10].mxu0 }
 0x10c   :  { %v178_v32 = vadd.f32 %v512_v30, %v398_v0  ;;  %v172_v33 = vpop.f32.mrb[11].mxu0 }
 0x10d   :  { %v173_v34 = vadd.f32 %v398_v0, %v172_v33  ;;  %563 = vmatprep.mubr.f32.mxu1 %v209_v29 }
 0x10e   :  { %564 = vmatmul.mubr.f32.gmra.mrb[8].mxu1 %v210_v31  ;;  %v212_v37 = vmax.f32 %v178_v32, 0.0 }
 0x10f   :  { %v211_v35 = vmax.f32 %v173_v34, 0.0  ;;  %v515_v36 = vpop.f32.mrb[12].mxu0 }
 0x110   :  { %v188_v38 = vadd.f32 %v515_v36, %v398_v0  ;;  %v182_v39 = vpop.f32.mrb[13].mxu0 }
 0x111   :  { %v183_v40 = vadd.f32 %v398_v0, %v182_v39  ;;  %566 = vmatprep.mubr.f32.mxu1 %v211_v35 }
 0x112   :  { %567 = vmatmul.mubr.f32.gmra.mrb[10].mxu1 %v212_v37  ;;  %v214_v43 = vmax.f32 %v188_v38, 0.0 }
 0x113   :  { %v213_v41 = vmax.f32 %v183_v40, 0.0  ;;  %v518_v42 = vpop.f32.mrb[14].mxu0 }
 0x114   :  { %v198_v44 = vadd.f32 %v518_v42, %v398_v0  ;;  %v192_v45 = vpop.f32.mrb[15].mxu0 }
 0x115   :  { %v193_v46 = vadd.f32 %v398_v0, %v192_v45  ;;  %569 = vmatprep.mubr.f32.mxu1 %v213_v41 }
 0x116   :  { %570 = vmatmul.mubr.f32.gmra.mrb[12].mxu1 %v214_v43  ;;  %v216_v48 = vmax.f32 %v198_v44, 0.0 }
 0x117   :  { %v215_v47 = vmax.f32 %v193_v46, 0.0 }
 0x119   :  { %572 = vmatprep.mubr.f32.mxu1 %v215_v47 }
 0x11a   :  { %573 = vmatmul.mubr.f32.gmra.mrb[14].mxu1 %v216_v48 }
 0x1d1   :  { %v553_v49 = vpop.f32.mrb[0].mxu1 }
 0x1d2   :  { %379 = vst [vmem:[%s863_s4 + $0x8] sm:$0xff] %v553_v49  ;;  %v299_v50 = vpop.f32.mrb[1].mxu1 }
 0x1d3   :  { %378 = vst [vmem:[%s863_s4] sm:$0xff] %v299_v50 }
 0x1d5   :  { %v556_v51 = vpop.f32.mrb[2].mxu1 }
 0x1d6   :  { %381 = vst [vmem:[%s863_s4 + $0x18] sm:$0xff] %v556_v51  ;;  %v309_v52 = vpop.f32.mrb[3].mxu1 }
 0x1d7   :  { %380 = vst [vmem:[%s863_s4 + $0x10] sm:$0xff] %v309_v52 }
 0x1d9   :  { %v559_v53 = vpop.f32.mrb[4].mxu1 }
 0x1da   :  { %383 = vst [vmem:[%s863_s4 + $0x28] sm:$0xff] %v559_v53  ;;  %v319_v54 = vpop.f32.mrb[5].mxu1 }
 0x1db   :  { %382 = vst [vmem:[%s863_s4 + $0x20] sm:$0xff] %v319_v54 }
 0x1dd   :  { %v562_v55 = vpop.f32.mrb[6].mxu1 }
 0x1de   :  { %385 = vst [vmem:[%s863_s4 + $0x38] sm:$0xff] %v562_v55  ;;  %v329_v56 = vpop.f32.mrb[7].mxu1 }
 0x1df   :  { %384 = vst [vmem:[%s863_s4 + $0x30] sm:$0xff] %v329_v56 }
 0x1e1   :  { %v565_v57 = vpop.f32.mrb[8].mxu1 }
 0x1e2   :  { %387 = vst [vmem:[%s863_s4 + $0x48] sm:$0xff] %v565_v57  ;;  %v339_v58 = vpop.f32.mrb[9].mxu1 }
 0x1e3   :  { %386 = vst [vmem:[%s863_s4 + $0x40] sm:$0xff] %v339_v58 }
 0x1e5   :  { %v568_v59 = vpop.f32.mrb[10].mxu1 }
 0x1e6   :  { %389 = vst [vmem:[%s863_s4 + $0x58] sm:$0xff] %v568_v59  ;;  %v349_v60 = vpop.f32.mrb[11].mxu1 }
 0x1e7   :  { %388 = vst [vmem:[%s863_s4 + $0x50] sm:$0xff] %v349_v60 }
 0x1e9   :  { %v571_v61 = vpop.f32.mrb[12].mxu1 }
 0x1ea   :  { %391 = vst [vmem:[%s863_s4 + $0x68] sm:$0xff] %v571_v61  ;;  %v359_v62 = vpop.f32.mrb[13].mxu1 }
 0x1eb   :  { %390 = vst [vmem:[%s863_s4 + $0x60] sm:$0xff] %v359_v62 }
 0x1ed   :  { %v574_v63 = vpop.f32.mrb[14].mxu1 }
 0x1ee   :  { %393 = vst [vmem:[%s863_s4 + $0x78] sm:$0xff] %v574_v63  ;;  %v369_v0 = vpop.f32.mrb[15].mxu1 }
 0x1ef   :  { %392 = vst [vmem:[%s863_s4 + $0x70] sm:$0xff] %v369_v0 }

</bundles_post_ra>
